<compile_context>
chip_gen: v5e
topology: v5e:2x2
jax: 0.10.0
libtpu: 0.0.40
codegen_flags: <defaults>
</compile_context>

<pallas_src>
import functools

import jax
import jax.numpy as jnp
from jax import lax
from jax.experimental import pallas as pl
from jax.experimental.pallas import tpu as pltpu

EPS = 1e-15
# Set to jnp.bfloat16 for ~2x MXU / DMA on v6e/v7x; f32 default keeps exact
# parity with the PyTorch reference numerics.
MXU_DTYPE = jnp.float32

_ROW = lambda i: (i, 0)    # row-tiled operand
_FULL = lambda i: (0, 0)   # operand resident across all row tiles (weights/bias)


def _row_tile(m, cap=512):
    """Row-tile size: full array if small, else 512 (keeps double-buffered tiles
    well under scoped VMEM on v5e/v6e/v7x and ~85% of HBM roofline)."""
    return m if m <= cap else cap


def _dot(a, b):
    return jnp.dot(a.astype(MXU_DTYPE), b.astype(MXU_DTYPE),
                   preferred_element_type=jnp.float32)


# --------------------------------------------------------------------------
# Pallas kernels
# --------------------------------------------------------------------------
def _mm_bias_kernel(x_ref, w_ref, b_ref, o_ref):
    o_ref[...] = _dot(x_ref[...], w_ref[...]) + b_ref[...]


def _fused_layer_kernel(D, x_ref, w_ref, b_ref, ws_ref, bs_ref, sp_ref,
                        xo_ref, so_ref):
    # One wide matmul over the shared im2col rows: [filter | gate | residual].
    y = _dot(x_ref[...], w_ref[...]) + b_ref[...]
    xn = jnp.tanh(y[:, :D]) * jax.nn.sigmoid(y[:, D:2 * D]) + y[:, 2 * D:]
    xo_ref[...] = xn
    # Fused skip 1x1 conv + previous-skip accumulation.
    so_ref[...] = _dot(xn, ws_ref[...]) + bs_ref[...] + sp_ref[...]


def _tcn_res_kernel(D, x_ref, w_ref, b_ref, t_ref, r_ref):
    y = _dot(x_ref[...], w_ref[...]) + b_ref[...]
    t_ref[...] = jnp.tanh(y[:, :D]) * jax.nn.sigmoid(y[:, D:2 * D])
    r_ref[...] = y[:, 2 * D:]


def _add_skip_kernel(x_ref, r_ref, ws_ref, bs_ref, sp_ref, xo_ref, so_ref):
    xn = x_ref[...] + r_ref[...]
    xo_ref[...] = xn
    so_ref[...] = _dot(xn, ws_ref[...]) + bs_ref[...] + sp_ref[...]


def _adp_kernel(inp_ref, nv_ref, o_ref):
    # nodevec projection + relu + row softmax, per batch.
    nv = _dot(inp_ref[0], nv_ref[...])                                # (N, d)
    z = lax.dot_general(nv, nv, (((1,), (1,)), ((), ())),
                        preferred_element_type=jnp.float32)            # (N, N)
    z = jnp.maximum(z, 0.0)
    z = z - jnp.max(z, axis=-1, keepdims=True)
    e = jnp.exp(z)
    o_ref[0] = e / jnp.sum(e, axis=-1, keepdims=True)


def _nconv_kernel(order, a_ref, x_ref, *o_refs):
    # Graph diffusion hops: h1 = a@x (no relu), h_k = relu(a@h_{k-1}).
    a = a_ref[0]
    h = x_ref[0]
    for j in range(order):
        h = _dot(a, h)
        if j > 0:
            h = jnp.maximum(h, 0.0)
        o_refs[j][0] = h


def _gcn_mlp_kernel(n_terms, r_out, *refs):
    # Both gcn2 1x1 MLPs (gconv + gconv_pool, BN folded in) as one wide matmul.
    xs = refs[:n_terms]
    ws = refs[n_terms:2 * n_terms]
    b_ref = refs[2 * n_terms]
    o1_ref, o2_ref = refs[2 * n_terms + 1], refs[2 * n_terms + 2]
    acc = _dot(xs[0][...], ws[0][...])
    for j in range(1, n_terms):
        acc = acc + _dot(xs[j][...], ws[j][...])
    acc = acc + b_ref[...]
    o1_ref[...] = acc[:, :r_out]
    o2_ref[...] = acc[:, r_out:]


def _smooth_kernel(T, x_ref, s_ref, o_ref):
    # x_ref: (1, N, T, F), s_ref: (1, N, T, C), o_ref: (1, T, N, F)
    xb = x_ref[0]                              # (N, T, F)
    sb = s_ref[0]                              # (N, T, C)
    for t in range(T):                         # T is small at block boundaries
        x = xb[:, t, :]                        # (N, F)
        sl = sb[:, t, :]                       # (N, C)
        # softmax over the cluster axis (torch dim=1)
        e = jnp.exp(sl - jnp.max(sl, axis=1, keepdims=True))
        s = e / jnp.sum(e, axis=1, keepdims=True)
        # tmp[f, c] = sum_n x[n, f] * s[n, c]
        tmp = lax.dot_general(x, s, (((0,), (0,)), ((), ())),
                              preferred_element_type=jnp.float32)      # (F, C)
        # second softmax: over the node axis (torch dim=2) of the softmaxed s
        e2 = jnp.exp(s - jnp.max(s, axis=0, keepdims=True))
        s2 = e2 / jnp.sum(e2, axis=0, keepdims=True)                   # (N, C)
        # out[n, f] = sum_c s2[n, c] * tmp[f, c]
        o_ref[0, t] = lax.dot_general(s2, tmp, (((1,), (1,)), ((), ())),
                                      preferred_element_type=jnp.float32)


# --------------------------------------------------------------------------
# Pallas wrappers (row-tiled, "parallel" grid axes)
# --------------------------------------------------------------------------
def matmul_bias(x, w, b):
    M, Kd = x.shape
    Nc = w.shape[1]
    TM = _row_tile(M)
    return pl.pallas_call(
        _mm_bias_kernel,
        out_shape=jax.ShapeDtypeStruct((M, Nc), jnp.float32),
        grid=(pl.cdiv(M, TM),),
        in_specs=[pl.BlockSpec((TM, Kd), _ROW),
                  pl.BlockSpec((Kd, Nc), _FULL),
                  pl.BlockSpec((1, Nc), _FULL)],
        out_specs=pl.BlockSpec((TM, Nc), _ROW),
        compiler_params=pltpu.CompilerParams(dimension_semantics=("parallel",)),
    )(x, w, b.reshape(1, Nc))


def fused_layer(xr, w_cat, b_cat, ws, bs, skip_prev, D):
    M, KC = xr.shape
    W = w_cat.shape[1]
    SK = ws.shape[1]
    TM = _row_tile(M)
    return pl.pallas_call(
        functools.partial(_fused_layer_kernel, D),
        out_shape=(jax.ShapeDtypeStruct((M, D), jnp.float32),
                   jax.ShapeDtypeStruct((M, SK), jnp.float32)),
        grid=(pl.cdiv(M, TM),),
        in_specs=[pl.BlockSpec((TM, KC), _ROW),
                  pl.BlockSpec((KC, W), _FULL),
                  pl.BlockSpec((1, W), _FULL),
                  pl.BlockSpec((ws.shape[0], SK), _FULL),
                  pl.BlockSpec((1, SK), _FULL),
                  pl.BlockSpec((TM, SK), _ROW)],
        out_specs=(pl.BlockSpec((TM, D), _ROW),
                   pl.BlockSpec((TM, SK), _ROW)),
        compiler_params=pltpu.CompilerParams(dimension_semantics=("parallel",)),
    )(xr, w_cat, b_cat, ws, bs, skip_prev)


def tcn_residual(xr, w_cat, b_cat, D):
    M, KC = xr.shape
    W = w_cat.shape[1]
    R = W - 2 * D
    TM = _row_tile(M)
    return pl.pallas_call(
        functools.partial(_tcn_res_kernel, D),
        out_shape=(jax.ShapeDtypeStruct((M, D), jnp.float32),
                   jax.ShapeDtypeStruct((M, R), jnp.float32)),
        grid=(pl.cdiv(M, TM),),
        in_specs=[pl.BlockSpec((TM, KC), _ROW),
                  pl.BlockSpec((KC, W), _FULL),
                  pl.BlockSpec((1, W), _FULL)],
        out_specs=(pl.BlockSpec((TM, D), _ROW),
                   pl.BlockSpec((TM, R), _ROW)),
        compiler_params=pltpu.CompilerParams(dimension_semantics=("parallel",)),
    )(xr, w_cat, b_cat)


def add_skip(x_rows, res_rows, ws, bs, skip_prev):
    M, D = x_rows.shape
    R = res_rows.shape[1]
    SK = ws.shape[1]
    TM = _row_tile(M)
    return pl.pallas_call(
        _add_skip_kernel,
        out_shape=(jax.ShapeDtypeStruct((M, D), jnp.float32),
                   jax.ShapeDtypeStruct((M, SK), jnp.float32)),
        grid=(pl.cdiv(M, TM),),
        in_specs=[pl.BlockSpec((TM, D), _ROW),
                  pl.BlockSpec((TM, R), _ROW),
                  pl.BlockSpec((ws.shape[0], SK), _FULL),
                  pl.BlockSpec((1, SK), _FULL),
                  pl.BlockSpec((TM, SK), _ROW)],
        out_specs=(pl.BlockSpec((TM, D), _ROW),
                   pl.BlockSpec((TM, SK), _ROW)),
        compiler_params=pltpu.CompilerParams(dimension_semantics=("parallel",)),
    )(x_rows, res_rows, ws, bs, skip_prev)


def adaptive_adj(inp0, nodevec):
    """softmax(relu((inp0 @ nodevec) @ (inp0 @ nodevec)^T), axis=-1) per batch."""
    B, N, T = inp0.shape
    d = nodevec.shape[1]
    return pl.pallas_call(
        _adp_kernel,
        out_shape=jax.ShapeDtypeStruct((B, N, N), jnp.float32),
        grid=(B,),
        in_specs=[pl.BlockSpec((1, N, T), lambda b: (b, 0, 0)),
                  pl.BlockSpec((T, d), lambda b: (0, 0))],
        out_specs=pl.BlockSpec((1, N, N), lambda b: (b, 0, 0)),
        compiler_params=pltpu.CompilerParams(dimension_semantics=("parallel",)),
    )(inp0, nodevec)


def nconv_hops(a, x_flat, order):
    """All `order` diffusion hops of einsum('ncvl,nwv->ncwl') in one launch."""
    B, Nn, F = x_flat.shape
    outs = pl.pallas_call(
        functools.partial(_nconv_kernel, order),
        out_shape=tuple(jax.ShapeDtypeStruct((B, Nn, F), jnp.float32)
                        for _ in range(order)),
        grid=(B,),
        in_specs=[pl.BlockSpec((1, Nn, Nn), lambda b: (b, 0, 0)),
                  pl.BlockSpec((1, Nn, F), lambda b: (b, 0, 0))],
        out_specs=tuple(pl.BlockSpec((1, Nn, F), lambda b: (b, 0, 0))
                        for _ in range(order)),
        compiler_params=pltpu.CompilerParams(dimension_semantics=("parallel",)),
    )(a, x_flat)
    if not isinstance(outs, (tuple, list)):
        outs = (outs,)
    return list(outs)


def gcn_dual_mlp(terms, w_list, b_cat, r_out):
    M, D = terms[0].shape
    W = w_list[0].shape[1]
    n = len(terms)
    TM = _row_tile(M)
    return pl.pallas_call(
        functools.partial(_gcn_mlp_kernel, n, r_out),
        out_shape=(jax.ShapeDtypeStruct((M, r_out), jnp.float32),
                   jax.ShapeDtypeStruct((M, W - r_out), jnp.float32)),
        grid=(pl.cdiv(M, TM),),
        in_specs=([pl.BlockSpec((TM, D), _ROW) for _ in range(n)]
                  + [pl.BlockSpec((D, W), _FULL) for _ in range(n)]
                  + [pl.BlockSpec((1, W), _FULL)]),
        out_specs=(pl.BlockSpec((TM, r_out), _ROW),
                   pl.BlockSpec((TM, W - r_out), _ROW)),
        compiler_params=pltpu.CompilerParams(dimension_semantics=("parallel",)),
    )(*terms, *w_list, b_cat)


def in_cluster_smoothing(x, s):
    """noT=False path; x: (B, N, T, F), s: (B, N, T, C) -> (B, N, T, F)."""
    B, N, T, F = x.shape
    C = s.shape[3]
    out = pl.pallas_call(
        functools.partial(_smooth_kernel, T),
        out_shape=jax.ShapeDtypeStruct((B, T, N, F), jnp.float32),
        grid=(B,),
        in_specs=[pl.BlockSpec((1, N, T, F), lambda b: (b, 0, 0, 0)),
                  pl.BlockSpec((1, N, T, C), lambda b: (b, 0, 0, 0))],
        out_specs=pl.BlockSpec((1, T, N, F), lambda b: (b, 0, 0, 0)),
        compiler_params=pltpu.CompilerParams(dimension_semantics=("parallel",)),
    )(x, s)
    return jnp.transpose(out, (0, 2, 1, 3))   # tiny relayout, once per block


# --------------------------------------------------------------------------
# Weight preparation (tiny, done in XLA under jit)
# --------------------------------------------------------------------------
def _conv1x1_w(w):
    """Conv2d (Cout, Cin, 1, 1) -> (Cin, Cout) for channel-last row matmuls."""
    return jnp.transpose(w[:, :, 0, 0], (1, 0))


def _conv1k_w(w):
    """Conv2d (Cout, Cin, 1, K) stride (1,K) -> (K*Cin, Cout) matching the free
    channel-last im2col whose columns are ordered (k, c_in)."""
    Cout, Cin, _, K = w.shape
    return jnp.transpose(w[:, :, 0, :], (2, 1, 0)).reshape(K * Cin, Cout)


def _bn_affine(p):
    inv = p["gamma"] / jnp.sqrt(p["var"] + EPS)
    return inv, p["beta"] - p["mean"] * inv


# --------------------------------------------------------------------------
# Model: parameters + forward
# --------------------------------------------------------------------------
def init_params(key, *, num_nodes, in_dim, seq_len, R, D, SK, K,
                total_layers, block_layers, supports_len, out_class, order=2):
    clusters = [120, 80, 60, 40, 17, 7, 3] if seq_len == 32 else [100, 50, 17, 7]
    assert len(clusters) >= total_layers // block_layers
    keys = iter(jax.random.split(key, 256))

    def nrm(shape, scale=0.1):
        return scale * jax.random.normal(next(keys), shape, dtype=jnp.float32)

    p = {"nodevec": jax.random.normal(next(keys), (seq_len, 5), dtype=jnp.float32),
         "start_conv": {"w": nrm((R, in_dim, 1, 1)), "b": nrm((R,))},
         "filter": [], "gate": [], "residual": [], "skip": [],
         "gconv": [], "bn": [], "gconv_pool": [], "pool_bn": []}
    c_in_g = (order * supports_len + 1) * D
    for i in range(total_layers):
        blk = i // block_layers
        p["filter"].append({"w": nrm((D, R, 1, K)), "b": nrm((D,))})
        p["gate"].append({"w": nrm((D, R, 1, K)), "b": nrm((D,))})
        p["residual"].append({"w": nrm((R, D, 1, K)), "b": nrm((R,))})
        p["skip"].append({"w": nrm((SK, D, 1, 1)), "b": nrm((SK,))})
        if i % block_layers == block_layers - 1:
            p["gconv"].append({"w": nrm((R, c_in_g, 1, 1)), "b": nrm((R,))})
            p["bn"].append({"gamma": 1.0 + nrm((R,)), "beta": nrm((R,)),
                            "mean": jnp.zeros((R,), jnp.float32),
                            "var": jnp.ones((R,), jnp.float32)})
            C = clusters[blk]
            p["gconv_pool"].append({"w": nrm((C, c_in_g, 1, 1)), "b": nrm((C,))})
            p["pool_bn"].append({"gamma": 1.0 + nrm((C,)), "beta": nrm((C,)),
                                 "mean": jnp.zeros((C,), jnp.float32),
                                 "var": jnp.ones((C,), jnp.float32)})
    p["cl1"] = {"w": nrm((SK // 4, SK)), "b": nrm((SK // 4,))}
    p["cl2"] = {"w": nrm((out_class, SK // 4)), "b": nrm((out_class,))}
    p["cl_node1"] = {"w": nrm((num_nodes // 2, num_nodes)), "b": nrm((num_nodes // 2,))}
    p["cl_node2"] = {"w": nrm((1, num_nodes // 2)), "b": nrm((1,))}
    return p


def mls_classifier_forward(params, inputs, *, total_layers, block_layers, order=2):
    # inputs: (B, in_dim, num_nodes, seq_len)  (PyTorch NCHW)
    B, in_dim, N, T = inputs.shape
    Rch = params["start_conv"]["w"].shape[0]
    SK = params["skip"][0]["w"].shape[0]

    # --- get_adp: adaptive adjacency (nodevec projection fused in) ----------
    adp = adaptive_adj(inputs[:, 0], params["nodevec"])       # (B, N, N)
    supports = [adp]                                           # addaptadj only

    # --- channel-last rows layout (B, N, T, C); start 1x1 conv --------------
    xrows = jnp.transpose(inputs, (0, 2, 3, 1)).reshape(B * N * T, in_dim)
    x = matmul_bias(xrows, _conv1x1_w(params["start_conv"]["w"]),
                    params["start_conv"]["b"]).reshape(B, N, T, Rch)

    skip = None
    for i in range(total_layers):
        wf, bf = params["filter"][i]["w"], params["filter"][i]["b"]
        wg, bg = params["gate"][i]["w"], params["gate"][i]["b"]
        wr, br = params["residual"][i]["w"], params["residual"][i]["b"]
        ws = _conv1x1_w(params["skip"][i]["w"])                # (D, SK)
        bs = params["skip"][i]["b"].reshape(1, SK)
        D, _, _, K = wf.shape
        Tc, Cc = x.shape[2], x.shape[3]
        Tout = (Tc - K) // K + 1
        M = B * N * Tout

        # free im2col in channel-last layout: rows (b, n, t_out), cols (k, c_in)
        xr = x[:, :, :Tout * K, :].reshape(M, K * Cc)

        # previous skip, max-pooled / tail-sliced to Tout (torch bookkeeping)
        if skip is None:
            skip_prev = jnp.zeros((M, SK), jnp.float32)
        else:
            Ts = skip.shape[2]
            if Tout * 2 == Ts:
                sk = jnp.max(skip.reshape(B, N, Tout, 2, SK), axis=3)
            else:
                sk = skip[:, :, Ts - Tout:, :]
            skip_prev = sk.reshape(M, SK)

        # filter | gate | residual -> single wide matmul on the shared im2col
        w_cat = jnp.concatenate([_conv1k_w(wf), _conv1k_w(wg), _conv1k_w(wr)],
                                axis=1)
        b_cat = jnp.concatenate([bf, bg, br]).reshape(1, -1)

        if i % block_layers != block_layers - 1:
            # fused: tcn + residual conv + add + skip conv + skip accumulate
            x_rows, s_rows = fused_layer(xr, w_cat, b_cat, ws, bs, skip_prev, D)
        else:
            blk = i // block_layers
            tcn_rows, res_rows = tcn_residual(xr, w_cat, b_cat, D)

            # gcn2: diffusion hops shared by gconv and gconv_pool
            terms = [tcn_rows]
            x_flat = tcn_rows.reshape(B, N, Tout * D)
            for a in supports:
                hops = nconv_hops(a, x_flat, order)
                terms += [h.reshape(M, D) for h in hops]

            # both 1x1 MLPs with eval-mode BatchNorm folded in, one wide matmul
            invR, shR = _bn_affine(params["bn"][blk])
            invC, shC = _bn_affine(params["pool_bn"][blk])
            wR = params["gconv"][blk]["w"][:, :, 0, 0]
            bR = params["gconv"][blk]["b"]
            wC = params["gconv_pool"][blk]["w"][:, :, 0, 0]
            bC = params["gconv_pool"][blk]["b"]
            Ccl = wC.shape[0]
            w_list = [jnp.concatenate(
                [wR[:, j * D:(j + 1) * D].T * invR[None, :],
                 wC[:, j * D:(j + 1) * D].T * invC[None, :]], axis=1)
                for j in range(len(terms))]
            b_mlp = jnp.concatenate([bR * invR + shR, bC * invC + shC]).reshape(1, -1)
            x1_rows, S_rows = gcn_dual_mlp(terms, w_list, b_mlp, Rch)

            # in-cluster smoothing (double softmax + two contractions)
            x_sm = in_cluster_smoothing(x1_rows.reshape(B, N, Tout, Rch),
                                        S_rows.reshape(B, N, Tout, Ccl))

            # fused: residual add + skip conv + skip accumulate
            x_rows, s_rows = add_skip(x_sm.reshape(M, Rch), res_rows, ws, bs,
                                      skip_prev)

        x = x_rows.reshape(B, N, Tout, -1)
        skip = s_rows.reshape(B, N, Tout, SK)

    # --- classifier head: tiny matmuls, left to XLA (launch-overhead bound) --
    assert skip.shape[2] == 1, "seq_len / kernel_size / total_layers must reduce time to 1"
    h = jnp.maximum(skip[:, :, 0, :], 0.0)                       # (B, N, SK)
    w1, b1 = params["cl_node1"]["w"], params["cl_node1"]["b"]
    w2, b2 = params["cl_node2"]["w"], params["cl_node2"]["b"]
    h = jnp.einsum('bns,mn->bsm', h, w1) + b1                    # (B, SK, N//2)
    h = jnp.maximum(h, 0.0)
    h = jnp.einsum('bsm,om->bso', h, w2) + b2                    # (B, SK, 1)
    h = h[:, :, 0]                                               # (B, SK)
    h = jnp.maximum(jnp.dot(h, params["cl1"]["w"].T) + params["cl1"]["b"], 0.0)
    return jnp.dot(h, params["cl2"]["w"].T) + params["cl2"]["b"]  # (B, out_class)


# --------------------------------------------------------------------------
if __name__ == "__main__":
    # Small, self-consistent config (kernel_size=3, stride-3 time convs ->
    # seq_len=9 survives exactly total_layers=2 layers: 9 -> 3 -> 1).
    B, IN_DIM, N_NODES, SEQ_LEN = 2, 2, 8, 9
    R = D = 8            # residual / dilation channels
    SK = 16              # skip channels
    K = 3                # kernel_size
    TOTAL_LAYERS, BLOCK_LAYERS = 2, 2
    OUT_CLASS = 6
    SUPPORTS_LEN = 1     # adaptive adjacency only (supports=None at call time)

    key = jax.random.PRNGKey(0)
    k_in, k_par = jax.random.split(key)
    inputs = jax.random.normal(k_in, (B, IN_DIM, N_NODES, SEQ_LEN), dtype=jnp.float32)
    params = init_params(k_par, num_nodes=N_NODES, in_dim=IN_DIM, seq_len=SEQ_LEN,
                         R=R, D=D, SK=SK, K=K, total_layers=TOTAL_LAYERS,
                         block_layers=BLOCK_LAYERS, supports_len=SUPPORTS_LEN,
                         out_class=OUT_CLASS)

    fwd = jax.jit(functools.partial(mls_classifier_forward,
                                    total_layers=TOTAL_LAYERS,
                                    block_layers=BLOCK_LAYERS))
    out = fwd(params, inputs)
    jax.block_until_ready(out)
    assert out.shape == (B, OUT_CLASS), out.shape
    assert bool(jnp.all(jnp.isfinite(out)))
    print("KERNEL_OK")
</pallas_src>

<mosaic_0001>
module attributes {stable_mosaic.version = 11 : i64} {
  func.func @_mm_bias_kernel(%arg0: i32, %arg1: memref<144x2xf32, #tpu.memory_space<vmem>>, %arg2: memref<2x8xf32, #tpu.memory_space<vmem>>, %arg3: memref<1x8xf32, #tpu.memory_space<vmem>>, %arg4: memref<144x8xf32, #tpu.memory_space<vmem>>) attributes {dimension_semantics = [#tpu.dimension_semantics<parallel>], iteration_bounds = array<i64: 1>, scalar_prefetch = 0 : i64, scratch_operands = 0 : i64, tpu.core_type = #tpu.core_type<tc>, window_params = [{transform_indices = @transform_0, window_bounds = array<i64: 144, 2>}, {pipeline_mode = #tpu.pipeline_mode<synchronous>, transform_indices = @transform_1, window_bounds = array<i64: 2, 8>}, {pipeline_mode = #tpu.pipeline_mode<synchronous>, transform_indices = @transform_2, window_bounds = array<i64: 1, 8>}, {transform_indices = @transform_3, window_bounds = array<i64: 144, 8>}]} {
    %c0 = arith.constant 0 : index
    %c0_0 = arith.constant 0 : index
    %0 = vector.load %arg1[%c0, %c0_0] : memref<144x2xf32, #tpu.memory_space<vmem>>, vector<144x2xf32>
    %c0_1 = arith.constant 0 : index
    %c0_2 = arith.constant 0 : index
    %1 = vector.load %arg2[%c0_1, %c0_2] : memref<2x8xf32, #tpu.memory_space<vmem>>, vector<2x8xf32>
    %cst = arith.constant dense<0.000000e+00> : vector<144x8xf32>
    %2 = tpu.matmul %0, %1, %cst {dimension_numbers = #tpu.dot_dimension_numbers<[1], [0], [0], [1], [0, 0, 1, 1], [], []>} : vector<144x2xf32>, vector<2x8xf32>, vector<144x8xf32> -> vector<144x8xf32>
    %c0_3 = arith.constant 0 : index
    %c0_4 = arith.constant 0 : index
    %3 = vector.load %arg3[%c0_3, %c0_4] : memref<1x8xf32, #tpu.memory_space<vmem>>, vector<1x8xf32>
    %4 = vector.broadcast %3 : vector<1x8xf32> to vector<144x8xf32>
    %5 = arith.addf %2, %4 : vector<144x8xf32>
    %c0_5 = arith.constant 0 : index
    %c0_6 = arith.constant 0 : index
    %6 = vector.load %arg4[%c0_5, %c0_6] : memref<144x8xf32, #tpu.memory_space<vmem>>, vector<144x8xf32>
    tpu.vector_store %arg4[%c0_5, %c0_6], %5 {strides = array<i32>} : memref<144x8xf32, #tpu.memory_space<vmem>>, vector<144x8xf32>,
    return
  }
  func.func @transform_0(%arg0: i32) -> (i32, i32) {
    %c0_i32 = arith.constant 0 : i32
    %c0_i32_0 = arith.constant 0 : i32
    return %arg0, %c0_i32 : i32, i32
  }
  func.func @transform_1(%arg0: i32) -> (i32, i32) {
    %c0_i32 = arith.constant 0 : i32
    %c0_i32_0 = arith.constant 0 : i32
    %c0_i32_1 = arith.constant 0 : i32
    return %c0_i32, %c0_i32_0 : i32, i32
  }
  func.func @transform_2(%arg0: i32) -> (i32, i32) {
    %c0_i32 = arith.constant 0 : i32
    %c0_i32_0 = arith.constant 0 : i32
    %c0_i32_1 = arith.constant 0 : i32
    return %c0_i32, %c0_i32_0 : i32, i32
  }
  func.func @transform_3(%arg0: i32) -> (i32, i32) {
    %c0_i32 = arith.constant 0 : i32
    %c0_i32_0 = arith.constant 0 : i32
    return %arg0, %c0_i32 : i32, i32
  }
}

module attributes {stable_mosaic.version = 11 : i64} {
  func.func @_fused_layer_kernel(%arg0: i32, %arg1: memref<48x24xf32, #tpu.memory_space<vmem>>, %arg2: memref<24x24xf32, #tpu.memory_space<vmem>>, %arg3: memref<1x24xf32, #tpu.memory_space<vmem>>, %arg4: memref<8x16xf32, #tpu.memory_space<vmem>>, %arg5: memref<1x16xf32, #tpu.memory_space<vmem>>, %arg6: memref<48x16xf32, #tpu.memory_space<vmem>>, %arg7: memref<48x8xf32, #tpu.memory_space<vmem>>, %arg8: memref<48x16xf32, #tpu.memory_space<vmem>>) attributes {dimension_semantics = [#tpu.dimension_semantics<parallel>], iteration_bounds = array<i64: 1>, scalar_prefetch = 0 : i64, scratch_operands = 0 : i64, tpu.core_type = #tpu.core_type<tc>, window_params = [{transform_indices = @transform_0, window_bounds = array<i64: 48, 24>}, {pipeline_mode = #tpu.pipeline_mode<synchronous>, transform_indices = @transform_1, window_bounds = array<i64: 24, 24>}, {pipeline_mode = #tpu.pipeline_mode<synchronous>, transform_indices = @transform_2, window_bounds = array<i64: 1, 24>}, {pipeline_mode = #tpu.pipeline_mode<synchronous>, transform_indices = @transform_3, window_bounds = array<i64: 8, 16>}, {pipeline_mode = #tpu.pipeline_mode<synchronous>, transform_indices = @transform_4, window_bounds = array<i64: 1, 16>}, {transform_indices = @transform_5, window_bounds = array<i64: 48, 16>}, {transform_indices = @transform_6, window_bounds = array<i64: 48, 8>}, {transform_indices = @transform_7, window_bounds = array<i64: 48, 16>}]} {
    %c0 = arith.constant 0 : index
    %c0_0 = arith.constant 0 : index
    %0 = vector.load %arg1[%c0, %c0_0] : memref<48x24xf32, #tpu.memory_space<vmem>>, vector<48x24xf32>
    %c0_1 = arith.constant 0 : index
    %c0_2 = arith.constant 0 : index
    %1 = vector.load %arg2[%c0_1, %c0_2] : memref<24x24xf32, #tpu.memory_space<vmem>>, vector<24x24xf32>
    %cst = arith.constant dense<0.000000e+00> : vector<48x24xf32>
    %2 = tpu.matmul %0, %1, %cst {dimension_numbers = #tpu.dot_dimension_numbers<[1], [0], [0], [1], [0, 0, 1, 1], [], []>} : vector<48x24xf32>, vector<24x24xf32>, vector<48x24xf32> -> vector<48x24xf32>
    %c0_3 = arith.constant 0 : index
    %c0_4 = arith.constant 0 : index
    %3 = vector.load %arg3[%c0_3, %c0_4] : memref<1x24xf32, #tpu.memory_space<vmem>>, vector<1x24xf32>
    %4 = vector.broadcast %3 : vector<1x24xf32> to vector<48x24xf32>
    %5 = arith.addf %2, %4 : vector<48x24xf32>
    %6 = vector.extract_strided_slice %5 {offsets = [0, 0], sizes = [48, 8], strides = [1, 1]} : vector<48x24xf32> to vector<48x8xf32>
    %7 = math.tanh %6 : vector<48x8xf32>
    %8 = vector.extract_strided_slice %5 {offsets = [0, 8], sizes = [48, 8], strides = [1, 1]} : vector<48x24xf32> to vector<48x8xf32>
    %9 = arith.negf %8 : vector<48x8xf32>
    %10 = math.exp %9 : vector<48x8xf32>
    %cst_5 = arith.constant 1.000000e+00 : f32
    %11 = vector.broadcast %cst_5 : f32 to vector<48x8xf32>
    %12 = arith.addf %11, %10 : vector<48x8xf32>
    %13 = arith.divf %11, %12 : vector<48x8xf32>
    %14 = arith.mulf %7, %13 : vector<48x8xf32>
    %15 = vector.extract_strided_slice %5 {offsets = [0, 16], sizes = [48, 8], strides = [1, 1]} : vector<48x24xf32> to vector<48x8xf32>
    %16 = arith.addf %14, %15 : vector<48x8xf32>
    %c0_6 = arith.constant 0 : index
    %c0_7 = arith.constant 0 : index
    %17 = vector.load %arg7[%c0_6, %c0_7] : memref<48x8xf32, #tpu.memory_space<vmem>>, vector<48x8xf32>
    tpu.vector_store %arg7[%c0_6, %c0_7], %16 {strides = array<i32>} : memref<48x8xf32, #tpu.memory_space<vmem>>, vector<48x8xf32>,
    %c0_8 = arith.constant 0 : index
    %c0_9 = arith.constant 0 : index
    %18 = vector.load %arg4[%c0_8, %c0_9] : memref<8x16xf32, #tpu.memory_space<vmem>>, vector<8x16xf32>
    %cst_10 = arith.constant dense<0.000000e+00> : vector<48x16xf32>
    %19 = tpu.matmul %16, %18, %cst_10 {dimension_numbers = #tpu.dot_dimension_numbers<[1], [0], [0], [1], [0, 0, 1, 1], [], []>} : vector<48x8xf32>, vector<8x16xf32>, vector<48x16xf32> -> vector<48x16xf32>
    %c0_11 = arith.constant 0 : index
    %c0_12 = arith.constant 0 : index
    %20 = vector.load %arg5[%c0_11, %c0_12] : memref<1x16xf32, #tpu.memory_space<vmem>>, vector<1x16xf32>
    %21 = vector.broadcast %20 : vector<1x16xf32> to vector<48x16xf32>
    %22 = arith.addf %19, %21 : vector<48x16xf32>
    %c0_13 = arith.constant 0 : index
    %c0_14 = arith.constant 0 : index
    %23 = vector.load %arg6[%c0_13, %c0_14] : memref<48x16xf32, #tpu.memory_space<vmem>>, vector<48x16xf32>
    %24 = arith.addf %22, %23 : vector<48x16xf32>
    %c0_15 = arith.constant 0 : index
    %c0_16 = arith.constant 0 : index
    %25 = vector.load %arg8[%c0_15, %c0_16] : memref<48x16xf32, #tpu.memory_space<vmem>>, vector<48x16xf32>
    tpu.vector_store %arg8[%c0_15, %c0_16], %24 {strides = array<i32>} : memref<48x16xf32, #tpu.memory_space<vmem>>, vector<48x16xf32>,
    return
  }
  func.func @transform_0(%arg0: i32) -> (i32, i32) {
    %c0_i32 = arith.constant 0 : i32
    %c0_i32_0 = arith.constant 0 : i32
    return %arg0, %c0_i32 : i32, i32
  }
  func.func @transform_1(%arg0: i32) -> (i32, i32) {
    %c0_i32 = arith.constant 0 : i32
    %c0_i32_0 = arith.constant 0 : i32
    %c0_i32_1 = arith.constant 0 : i32
    return %c0_i32, %c0_i32_0 : i32, i32
  }
  func.func @transform_2(%arg0: i32) -> (i32, i32) {
    %c0_i32 = arith.constant 0 : i32
    %c0_i32_0 = arith.constant 0 : i32
    %c0_i32_1 = arith.constant 0 : i32
    return %c0_i32, %c0_i32_0 : i32, i32
  }
  func.func @transform_3(%arg0: i32) -> (i32, i32) {
    %c0_i32 = arith.constant 0 : i32
    %c0_i32_0 = arith.constant 0 : i32
    %c0_i32_1 = arith.constant 0 : i32
    return %c0_i32, %c0_i32_0 : i32, i32
  }
  func.func @transform_4(%arg0: i32) -> (i32, i32) {
    %c0_i32 = arith.constant 0 : i32
    %c0_i32_0 = arith.constant 0 : i32
    %c0_i32_1 = arith.constant 0 : i32
    return %c0_i32, %c0_i32_0 : i32, i32
  }
  func.func @transform_5(%arg0: i32) -> (i32, i32) {
    %c0_i32 = arith.constant 0 : i32
    %c0_i32_0 = arith.constant 0 : i32
    return %arg0, %c0_i32 : i32, i32
  }
  func.func @transform_6(%arg0: i32) -> (i32, i32) {
    %c0_i32 = arith.constant 0 : i32
    %c0_i32_0 = arith.constant 0 : i32
    return %arg0, %c0_i32 : i32, i32
  }
  func.func @transform_7(%arg0: i32) -> (i32, i32) {
    %c0_i32 = arith.constant 0 : i32
    %c0_i32_0 = arith.constant 0 : i32
    return %arg0, %c0_i32 : i32, i32
  }
}

module attributes {stable_mosaic.version = 11 : i64} {
  func.func @_tcn_res_kernel(%arg0: i32, %arg1: memref<16x24xf32, #tpu.memory_space<vmem>>, %arg2: memref<24x24xf32, #tpu.memory_space<vmem>>, %arg3: memref<1x24xf32, #tpu.memory_space<vmem>>, %arg4: memref<16x8xf32, #tpu.memory_space<vmem>>, %arg5: memref<16x8xf32, #tpu.memory_space<vmem>>) attributes {dimension_semantics = [#tpu.dimension_semantics<parallel>], iteration_bounds = array<i64: 1>, scalar_prefetch = 0 : i64, scratch_operands = 0 : i64, tpu.core_type = #tpu.core_type<tc>, window_params = [{transform_indices = @transform_0, window_bounds = array<i64: 16, 24>}, {pipeline_mode = #tpu.pipeline_mode<synchronous>, transform_indices = @transform_1, window_bounds = array<i64: 24, 24>}, {pipeline_mode = #tpu.pipeline_mode<synchronous>, transform_indices = @transform_2, window_bounds = array<i64: 1, 24>}, {transform_indices = @transform_3, window_bounds = array<i64: 16, 8>}, {transform_indices = @transform_4, window_bounds = array<i64: 16, 8>}]} {
    %c0 = arith.constant 0 : index
    %c0_0 = arith.constant 0 : index
    %0 = vector.load %arg1[%c0, %c0_0] : memref<16x24xf32, #tpu.memory_space<vmem>>, vector<16x24xf32>
    %c0_1 = arith.constant 0 : index
    %c0_2 = arith.constant 0 : index
    %1 = vector.load %arg2[%c0_1, %c0_2] : memref<24x24xf32, #tpu.memory_space<vmem>>, vector<24x24xf32>
    %cst = arith.constant dense<0.000000e+00> : vector<16x24xf32>
    %2 = tpu.matmul %0, %1, %cst {dimension_numbers = #tpu.dot_dimension_numbers<[1], [0], [0], [1], [0, 0, 1, 1], [], []>} : vector<16x24xf32>, vector<24x24xf32>, vector<16x24xf32> -> vector<16x24xf32>
    %c0_3 = arith.constant 0 : index
    %c0_4 = arith.constant 0 : index
    %3 = vector.load %arg3[%c0_3, %c0_4] : memref<1x24xf32, #tpu.memory_space<vmem>>, vector<1x24xf32>
    %4 = vector.broadcast %3 : vector<1x24xf32> to vector<16x24xf32>
    %5 = arith.addf %2, %4 : vector<16x24xf32>
    %6 = vector.extract_strided_slice %5 {offsets = [0, 0], sizes = [16, 8], strides = [1, 1]} : vector<16x24xf32> to vector<16x8xf32>
    %7 = math.tanh %6 : vector<16x8xf32>
    %8 = vector.extract_strided_slice %5 {offsets = [0, 8], sizes = [16, 8], strides = [1, 1]} : vector<16x24xf32> to vector<16x8xf32>
    %9 = arith.negf %8 : vector<16x8xf32>
    %10 = math.exp %9 : vector<16x8xf32>
    %cst_5 = arith.constant 1.000000e+00 : f32
    %11 = vector.broadcast %cst_5 : f32 to vector<16x8xf32>
    %12 = arith.addf %11, %10 : vector<16x8xf32>
    %13 = arith.divf %11, %12 : vector<16x8xf32>
    %14 = arith.mulf %7, %13 : vector<16x8xf32>
    %c0_6 = arith.constant 0 : index
    %c0_7 = arith.constant 0 : index
    %15 = vector.load %arg4[%c0_6, %c0_7] : memref<16x8xf32, #tpu.memory_space<vmem>>, vector<16x8xf32>
    tpu.vector_store %arg4[%c0_6, %c0_7], %14 {strides = array<i32>} : memref<16x8xf32, #tpu.memory_space<vmem>>, vector<16x8xf32>,
    %16 = vector.extract_strided_slice %5 {offsets = [0, 16], sizes = [16, 8], strides = [1, 1]} : vector<16x24xf32> to vector<16x8xf32>
    %c0_8 = arith.constant 0 : index
    %c0_9 = arith.constant 0 : index
    %17 = vector.load %arg5[%c0_8, %c0_9] : memref<16x8xf32, #tpu.memory_space<vmem>>, vector<16x8xf32>
    tpu.vector_store %arg5[%c0_8, %c0_9], %16 {strides = array<i32>} : memref<16x8xf32, #tpu.memory_space<vmem>>, vector<16x8xf32>,
    return
  }
  func.func @transform_0(%arg0: i32) -> (i32, i32) {
    %c0_i32 = arith.constant 0 : i32
    %c0_i32_0 = arith.constant 0 : i32
    return %arg0, %c0_i32 : i32, i32
  }
  func.func @transform_1(%arg0: i32) -> (i32, i32) {
    %c0_i32 = arith.constant 0 : i32
    %c0_i32_0 = arith.constant 0 : i32
    %c0_i32_1 = arith.constant 0 : i32
    return %c0_i32, %c0_i32_0 : i32, i32
  }
  func.func @transform_2(%arg0: i32) -> (i32, i32) {
    %c0_i32 = arith.constant 0 : i32
    %c0_i32_0 = arith.constant 0 : i32
    %c0_i32_1 = arith.constant 0 : i32
    return %c0_i32, %c0_i32_0 : i32, i32
  }
  func.func @transform_3(%arg0: i32) -> (i32, i32) {
    %c0_i32 = arith.constant 0 : i32
    %c0_i32_0 = arith.constant 0 : i32
    return %arg0, %c0_i32 : i32, i32
  }
  func.func @transform_4(%arg0: i32) -> (i32, i32) {
    %c0_i32 = arith.constant 0 : i32
    %c0_i32_0 = arith.constant 0 : i32
    return %arg0, %c0_i32 : i32, i32
  }
}

module attributes {stable_mosaic.version = 11 : i64} {
  func.func @_adp_kernel(%arg0: i32, %arg1: memref<1x8x9xf32, #tpu.memory_space<vmem>>, %arg2: memref<9x5xf32, #tpu.memory_space<vmem>>, %arg3: memref<1x8x8xf32, #tpu.memory_space<vmem>>) attributes {dimension_semantics = [#tpu.dimension_semantics<parallel>], iteration_bounds = array<i64: 2>, scalar_prefetch = 0 : i64, scratch_operands = 0 : i64, tpu.core_type = #tpu.core_type<tc>, window_params = [{transform_indices = @transform_0, window_bounds = array<i64: 1, 8, 9>}, {pipeline_mode = #tpu.pipeline_mode<synchronous>, transform_indices = @transform_1, window_bounds = array<i64: 9, 5>}, {transform_indices = @transform_2, window_bounds = array<i64: 1, 8, 8>}]} {
    %c0 = arith.constant 0 : index
    %c0_0 = arith.constant 0 : index
    %c0_1 = arith.constant 0 : index
    %0 = vector.load %arg1[%c0, %c0_0, %c0_1] : memref<1x8x9xf32, #tpu.memory_space<vmem>>, vector<1x8x9xf32>
    %1 = vector.shape_cast %0 : vector<1x8x9xf32> to vector<8x9xf32>
    %c0_2 = arith.constant 0 : index
    %c0_3 = arith.constant 0 : index
    %2 = vector.load %arg2[%c0_2, %c0_3] : memref<9x5xf32, #tpu.memory_space<vmem>>, vector<9x5xf32>
    %cst = arith.constant dense<0.000000e+00> : vector<8x5xf32>
    %3 = tpu.matmul %1, %2, %cst {dimension_numbers = #tpu.dot_dimension_numbers<[1], [0], [0], [1], [0, 0, 1, 1], [], []>} : vector<8x9xf32>, vector<9x5xf32>, vector<8x5xf32> -> vector<8x5xf32>
    %cst_4 = arith.constant dense<0.000000e+00> : vector<8x8xf32>
    %4 = tpu.matmul %3, %3, %cst_4 {dimension_numbers = #tpu.dot_dimension_numbers<[1], [1], [0], [0], [0, 0, 1, 0], [], []>} : vector<8x5xf32>, vector<8x5xf32>, vector<8x8xf32> -> vector<8x8xf32>
    %cst_5 = arith.constant 0.000000e+00 : f32
    %5 = vector.broadcast %cst_5 : f32 to vector<8x8xf32>
    %6 = arith.maximumf %4, %5 : vector<8x8xf32>
    %cst_6 = arith.constant dense<0xFF800000> : vector<8xf32>
    %7 = vector.multi_reduction <maximumf>, %6, %cst_6 [1] : vector<8x8xf32> to vector<8xf32>
    %8 = vector.shape_cast %7 : vector<8xf32> to vector<8x1xf32>
    %9 = vector.broadcast %8 : vector<8x1xf32> to vector<8x8xf32>
    %10 = arith.subf %6, %9 : vector<8x8xf32>
    %11 = math.exp %10 : vector<8x8xf32>
    %cst_7 = arith.constant dense<0.000000e+00> : vector<8xf32>
    %12 = vector.multi_reduction <add>, %11, %cst_7 [1] : vector<8x8xf32> to vector<8xf32>
    %13 = vector.shape_cast %12 : vector<8xf32> to vector<8x1xf32>
    %14 = vector.broadcast %13 : vector<8x1xf32> to vector<8x8xf32>
    %15 = arith.divf %11, %14 : vector<8x8xf32>
    %c0_8 = arith.constant 0 : index
    %c0_9 = arith.constant 0 : index
    %c0_10 = arith.constant 0 : index
    %16 = vector.load %arg3[%c0_8, %c0_9, %c0_10] : memref<1x8x8xf32, #tpu.memory_space<vmem>>, vector<1x8x8xf32>
    %17 = vector.shape_cast %16 : vector<1x8x8xf32> to vector<8x8xf32>
    %18 = vector.shape_cast %15 : vector<8x8xf32> to vector<1x8x8xf32>
    tpu.vector_store %arg3[%c0_8, %c0_9, %c0_10], %18 {strides = array<i32>} : memref<1x8x8xf32, #tpu.memory_space<vmem>>, vector<1x8x8xf32>,
    return
  }
  func.func @transform_0(%arg0: i32) -> (i32, i32, i32) {
    %c0_i32 = arith.constant 0 : i32
    %c0_i32_0 = arith.constant 0 : i32
    %c0_i32_1 = arith.constant 0 : i32
    return %arg0, %c0_i32, %c0_i32_0 : i32, i32, i32
  }
  func.func @transform_1(%arg0: i32) -> (i32, i32) {
    %c0_i32 = arith.constant 0 : i32
    %c0_i32_0 = arith.constant 0 : i32
    %c0_i32_1 = arith.constant 0 : i32
    return %c0_i32, %c0_i32_0 : i32, i32
  }
  func.func @transform_2(%arg0: i32) -> (i32, i32, i32) {
    %c0_i32 = arith.constant 0 : i32
    %c0_i32_0 = arith.constant 0 : i32
    %c0_i32_1 = arith.constant 0 : i32
    return %arg0, %c0_i32, %c0_i32_0 : i32, i32, i32
  }
}

module attributes {stable_mosaic.version = 11 : i64} {
  func.func @_nconv_kernel(%arg0: i32, %arg1: memref<1x8x8xf32, #tpu.memory_space<vmem>>, %arg2: memref<1x8x8xf32, #tpu.memory_space<vmem>>, %arg3: memref<1x8x8xf32, #tpu.memory_space<vmem>>, %arg4: memref<1x8x8xf32, #tpu.memory_space<vmem>>) attributes {dimension_semantics = [#tpu.dimension_semantics<parallel>], iteration_bounds = array<i64: 2>, scalar_prefetch = 0 : i64, scratch_operands = 0 : i64, tpu.core_type = #tpu.core_type<tc>, window_params = [{transform_indices = @transform_0, window_bounds = array<i64: 1, 8, 8>}, {transform_indices = @transform_1, window_bounds = array<i64: 1, 8, 8>}, {transform_indices = @transform_2, window_bounds = array<i64: 1, 8, 8>}, {transform_indices = @transform_3, window_bounds = array<i64: 1, 8, 8>}]} {
    %c0 = arith.constant 0 : index
    %c0_0 = arith.constant 0 : index
    %c0_1 = arith.constant 0 : index
    %0 = vector.load %arg1[%c0, %c0_0, %c0_1] : memref<1x8x8xf32, #tpu.memory_space<vmem>>, vector<1x8x8xf32>
    %1 = vector.shape_cast %0 : vector<1x8x8xf32> to vector<8x8xf32>
    %c0_2 = arith.constant 0 : index
    %c0_3 = arith.constant 0 : index
    %c0_4 = arith.constant 0 : index
    %2 = vector.load %arg2[%c0_2, %c0_3, %c0_4] : memref<1x8x8xf32, #tpu.memory_space<vmem>>, vector<1x8x8xf32>
    %3 = vector.shape_cast %2 : vector<1x8x8xf32> to vector<8x8xf32>
    %cst = arith.constant dense<0.000000e+00> : vector<8x8xf32>
    %4 = tpu.matmul %1, %3, %cst {dimension_numbers = #tpu.dot_dimension_numbers<[1], [0], [0], [1], [0, 0, 1, 1], [], []>} : vector<8x8xf32>, vector<8x8xf32>, vector<8x8xf32> -> vector<8x8xf32>
    %c0_5 = arith.constant 0 : index
    %c0_6 = arith.constant 0 : index
    %c0_7 = arith.constant 0 : index
    %5 = vector.load %arg3[%c0_5, %c0_6, %c0_7] : memref<1x8x8xf32, #tpu.memory_space<vmem>>, vector<1x8x8xf32>
    %6 = vector.shape_cast %5 : vector<1x8x8xf32> to vector<8x8xf32>
    %7 = vector.shape_cast %4 : vector<8x8xf32> to vector<1x8x8xf32>
    tpu.vector_store %arg3[%c0_5, %c0_6, %c0_7], %7 {strides = array<i32>} : memref<1x8x8xf32, #tpu.memory_space<vmem>>, vector<1x8x8xf32>,
    %cst_8 = arith.constant dense<0.000000e+00> : vector<8x8xf32>
    %8 = tpu.matmul %1, %4, %cst_8 {dimension_numbers = #tpu.dot_dimension_numbers<[1], [0], [0], [1], [0, 0, 1, 1], [], []>} : vector<8x8xf32>, vector<8x8xf32>, vector<8x8xf32> -> vector<8x8xf32>
    %cst_9 = arith.constant 0.000000e+00 : f32
    %9 = vector.broadcast %cst_9 : f32 to vector<8x8xf32>
    %10 = arith.maximumf %8, %9 : vector<8x8xf32>
    %c0_10 = arith.constant 0 : index
    %c0_11 = arith.constant 0 : index
    %c0_12 = arith.constant 0 : index
    %11 = vector.load %arg4[%c0_10, %c0_11, %c0_12] : memref<1x8x8xf32, #tpu.memory_space<vmem>>, vector<1x8x8xf32>
    %12 = vector.shape_cast %11 : vector<1x8x8xf32> to vector<8x8xf32>
    %13 = vector.shape_cast %10 : vector<8x8xf32> to vector<1x8x8xf32>
    tpu.vector_store %arg4[%c0_10, %c0_11, %c0_12], %13 {strides = array<i32>} : memref<1x8x8xf32, #tpu.memory_space<vmem>>, vector<1x8x8xf32>,
    return
  }
  func.func @transform_0(%arg0: i32) -> (i32, i32, i32) {
    %c0_i32 = arith.constant 0 : i32
    %c0_i32_0 = arith.constant 0 : i32
    %c0_i32_1 = arith.constant 0 : i32
    return %arg0, %c0_i32, %c0_i32_0 : i32, i32, i32
  }
  func.func @transform_1(%arg0: i32) -> (i32, i32, i32) {
    %c0_i32 = arith.constant 0 : i32
    %c0_i32_0 = arith.constant 0 : i32
    %c0_i32_1 = arith.constant 0 : i32
    return %arg0, %c0_i32, %c0_i32_0 : i32, i32, i32
  }
  func.func @transform_2(%arg0: i32) -> (i32, i32, i32) {
    %c0_i32 = arith.constant 0 : i32
    %c0_i32_0 = arith.constant 0 : i32
    %c0_i32_1 = arith.constant 0 : i32
    return %arg0, %c0_i32, %c0_i32_0 : i32, i32, i32
  }
  func.func @transform_3(%arg0: i32) -> (i32, i32, i32) {
    %c0_i32 = arith.constant 0 : i32
    %c0_i32_0 = arith.constant 0 : i32
    %c0_i32_1 = arith.constant 0 : i32
    return %arg0, %c0_i32, %c0_i32_0 : i32, i32, i32
  }
}

module attributes {stable_mosaic.version = 11 : i64} {
  func.func @_gcn_mlp_kernel(%arg0: i32, %arg1: memref<16x8xf32, #tpu.memory_space<vmem>>, %arg2: memref<16x8xf32, #tpu.memory_space<vmem>>, %arg3: memref<16x8xf32, #tpu.memory_space<vmem>>, %arg4: memref<8x108xf32, #tpu.memory_space<vmem>>, %arg5: memref<8x108xf32, #tpu.memory_space<vmem>>, %arg6: memref<8x108xf32, #tpu.memory_space<vmem>>, %arg7: memref<1x108xf32, #tpu.memory_space<vmem>>, %arg8: memref<16x8xf32, #tpu.memory_space<vmem>>, %arg9: memref<16x100xf32, #tpu.memory_space<vmem>>) attributes {dimension_semantics = [#tpu.dimension_semantics<parallel>], iteration_bounds = array<i64: 1>, scalar_prefetch = 0 : i64, scratch_operands = 0 : i64, tpu.core_type = #tpu.core_type<tc>, window_params = [{transform_indices = @transform_0, window_bounds = array<i64: 16, 8>}, {transform_indices = @transform_1, window_bounds = array<i64: 16, 8>}, {transform_indices = @transform_2, window_bounds = array<i64: 16, 8>}, {pipeline_mode = #tpu.pipeline_mode<synchronous>, transform_indices = @transform_3, window_bounds = array<i64: 8, 108>}, {pipeline_mode = #tpu.pipeline_mode<synchronous>, transform_indices = @transform_4, window_bounds = array<i64: 8, 108>}, {pipeline_mode = #tpu.pipeline_mode<synchronous>, transform_indices = @transform_5, window_bounds = array<i64: 8, 108>}, {pipeline_mode = #tpu.pipeline_mode<synchronous>, transform_indices = @transform_6, window_bounds = array<i64: 1, 108>}, {transform_indices = @transform_7, window_bounds = array<i64: 16, 8>}, {transform_indices = @transform_8, window_bounds = array<i64: 16, 100>}]} {
    %c0 = arith.constant 0 : index
    %c0_0 = arith.constant 0 : index
    %0 = vector.load %arg1[%c0, %c0_0] : memref<16x8xf32, #tpu.memory_space<vmem>>, vector<16x8xf32>
    %c0_1 = arith.constant 0 : index
    %c0_2 = arith.constant 0 : index
    %1 = vector.load %arg4[%c0_1, %c0_2] : memref<8x108xf32, #tpu.memory_space<vmem>>, vector<8x108xf32>
    %cst = arith.constant dense<0.000000e+00> : vector<16x108xf32>
    %2 = tpu.matmul %0, %1, %cst {dimension_numbers = #tpu.dot_dimension_numbers<[1], [0], [0], [1], [0, 0, 1, 1], [], []>} : vector<16x8xf32>, vector<8x108xf32>, vector<16x108xf32> -> vector<16x108xf32>
    %c0_3 = arith.constant 0 : index
    %c0_4 = arith.constant 0 : index
    %3 = vector.load %arg2[%c0_3, %c0_4] : memref<16x8xf32, #tpu.memory_space<vmem>>, vector<16x8xf32>
    %c0_5 = arith.constant 0 : index
    %c0_6 = arith.constant 0 : index
    %4 = vector.load %arg5[%c0_5, %c0_6] : memref<8x108xf32, #tpu.memory_space<vmem>>, vector<8x108xf32>
    %cst_7 = arith.constant dense<0.000000e+00> : vector<16x108xf32>
    %5 = tpu.matmul %3, %4, %cst_7 {dimension_numbers = #tpu.dot_dimension_numbers<[1], [0], [0], [1], [0, 0, 1, 1], [], []>} : vector<16x8xf32>, vector<8x108xf32>, vector<16x108xf32> -> vector<16x108xf32>
    %6 = arith.addf %2, %5 : vector<16x108xf32>
    %c0_8 = arith.constant 0 : index
    %c0_9 = arith.constant 0 : index
    %7 = vector.load %arg3[%c0_8, %c0_9] : memref<16x8xf32, #tpu.memory_space<vmem>>, vector<16x8xf32>
    %c0_10 = arith.constant 0 : index
    %c0_11 = arith.constant 0 : index
    %8 = vector.load %arg6[%c0_10, %c0_11] : memref<8x108xf32, #tpu.memory_space<vmem>>, vector<8x108xf32>
    %cst_12 = arith.constant dense<0.000000e+00> : vector<16x108xf32>
    %9 = tpu.matmul %7, %8, %cst_12 {dimension_numbers = #tpu.dot_dimension_numbers<[1], [0], [0], [1], [0, 0, 1, 1], [], []>} : vector<16x8xf32>, vector<8x108xf32>, vector<16x108xf32> -> vector<16x108xf32>
    %10 = arith.addf %6, %9 : vector<16x108xf32>
    %c0_13 = arith.constant 0 : index
    %c0_14 = arith.constant 0 : index
    %11 = vector.load %arg7[%c0_13, %c0_14] : memref<1x108xf32, #tpu.memory_space<vmem>>, vector<1x108xf32>
    %12 = vector.broadcast %11 : vector<1x108xf32> to vector<16x108xf32>
    %13 = arith.addf %10, %12 : vector<16x108xf32>
    %14 = vector.extract_strided_slice %13 {offsets = [0, 0], sizes = [16, 8], strides = [1, 1]} : vector<16x108xf32> to vector<16x8xf32>
    %c0_15 = arith.constant 0 : index
    %c0_16 = arith.constant 0 : index
    %15 = vector.load %arg8[%c0_15, %c0_16] : memref<16x8xf32, #tpu.memory_space<vmem>>, vector<16x8xf32>
    tpu.vector_store %arg8[%c0_15, %c0_16], %14 {strides = array<i32>} : memref<16x8xf32, #tpu.memory_space<vmem>>, vector<16x8xf32>,
    %16 = vector.extract_strided_slice %13 {offsets = [0, 8], sizes = [16, 100], strides = [1, 1]} : vector<16x108xf32> to vector<16x100xf32>
    %c0_17 = arith.constant 0 : index
    %c0_18 = arith.constant 0 : index
    %17 = vector.load %arg9[%c0_17, %c0_18] : memref<16x100xf32, #tpu.memory_space<vmem>>, vector<16x100xf32>
    tpu.vector_store %arg9[%c0_17, %c0_18], %16 {strides = array<i32>} : memref<16x100xf32, #tpu.memory_space<vmem>>, vector<16x100xf32>,
    return
  }
  func.func @transform_0(%arg0: i32) -> (i32, i32) {
    %c0_i32 = arith.constant 0 : i32
    %c0_i32_0 = arith.constant 0 : i32
    return %arg0, %c0_i32 : i32, i32
  }
  func.func @transform_1(%arg0: i32) -> (i32, i32) {
    %c0_i32 = arith.constant 0 : i32
    %c0_i32_0 = arith.constant 0 : i32
    return %arg0, %c0_i32 : i32, i32
  }
  func.func @transform_2(%arg0: i32) -> (i32, i32) {
    %c0_i32 = arith.constant 0 : i32
    %c0_i32_0 = arith.constant 0 : i32
    return %arg0, %c0_i32 : i32, i32
  }
  func.func @transform_3(%arg0: i32) -> (i32, i32) {
    %c0_i32 = arith.constant 0 : i32
    %c0_i32_0 = arith.constant 0 : i32
    %c0_i32_1 = arith.constant 0 : i32
    return %c0_i32, %c0_i32_0 : i32, i32
  }
  func.func @transform_4(%arg0: i32) -> (i32, i32) {
    %c0_i32 = arith.constant 0 : i32
    %c0_i32_0 = arith.constant 0 : i32
    %c0_i32_1 = arith.constant 0 : i32
    return %c0_i32, %c0_i32_0 : i32, i32
  }
  func.func @transform_5(%arg0: i32) -> (i32, i32) {
    %c0_i32 = arith.constant 0 : i32
    %c0_i32_0 = arith.constant 0 : i32
    %c0_i32_1 = arith.constant 0 : i32
    return %c0_i32, %c0_i32_0 : i32, i32
  }
  func.func @transform_6(%arg0: i32) -> (i32, i32) {
    %c0_i32 = arith.constant 0 : i32
    %c0_i32_0 = arith.constant 0 : i32
    %c0_i32_1 = arith.constant 0 : i32
    return %c0_i32, %c0_i32_0 : i32, i32
  }
  func.func @transform_7(%arg0: i32) -> (i32, i32) {
    %c0_i32 = arith.constant 0 : i32
    %c0_i32_0 = arith.constant 0 : i32
    return %arg0, %c0_i32 : i32, i32
  }
  func.func @transform_8(%arg0: i32) -> (i32, i32) {
    %c0_i32 = arith.constant 0 : i32
    %c0_i32_0 = arith.constant 0 : i32
    return %arg0, %c0_i32 : i32, i32
  }
}

module attributes {stable_mosaic.version = 11 : i64} {
  func.func @_smooth_kernel(%arg0: i32, %arg1: memref<1x8x1x8xf32, #tpu.memory_space<vmem>>, %arg2: memref<1x8x1x100xf32, #tpu.memory_space<vmem>>, %arg3: memref<1x1x8x8xf32, #tpu.memory_space<vmem>>) attributes {dimension_semantics = [#tpu.dimension_semantics<parallel>], iteration_bounds = array<i64: 2>, scalar_prefetch = 0 : i64, scratch_operands = 0 : i64, tpu.core_type = #tpu.core_type<tc>, window_params = [{transform_indices = @transform_0, window_bounds = array<i64: 1, 8, 1, 8>}, {transform_indices = @transform_1, window_bounds = array<i64: 1, 8, 1, 100>}, {transform_indices = @transform_2, window_bounds = array<i64: 1, 1, 8, 8>}]} {
    %c0 = arith.constant 0 : index
    %c0_0 = arith.constant 0 : index
    %c0_1 = arith.constant 0 : index
    %c0_2 = arith.constant 0 : index
    %0 = vector.load %arg1[%c0, %c0_0, %c0_1, %c0_2] : memref<1x8x1x8xf32, #tpu.memory_space<vmem>>, vector<1x8x1x8xf32>
    %1 = vector.shape_cast %0 : vector<1x8x1x8xf32> to vector<8x1x8xf32>
    %c0_3 = arith.constant 0 : index
    %c0_4 = arith.constant 0 : index
    %c0_5 = arith.constant 0 : index
    %c0_6 = arith.constant 0 : index
    %2 = vector.load %arg2[%c0_3, %c0_4, %c0_5, %c0_6] : memref<1x8x1x100xf32, #tpu.memory_space<vmem>>, vector<1x8x1x100xf32>
    %3 = vector.shape_cast %2 : vector<1x8x1x100xf32> to vector<8x1x100xf32>
    %4 = vector.shape_cast %1 : vector<8x1x8xf32> to vector<8x8xf32>
    %5 = vector.shape_cast %3 : vector<8x1x100xf32> to vector<8x100xf32>
    %cst = arith.constant dense<0xFF800000> : vector<8xf32>
    %6 = vector.multi_reduction <maximumf>, %5, %cst [1] : vector<8x100xf32> to vector<8xf32>
    %7 = vector.shape_cast %6 : vector<8xf32> to vector<8x1xf32>
    %8 = vector.broadcast %7 : vector<8x1xf32> to vector<8x100xf32>
    %9 = arith.subf %5, %8 : vector<8x100xf32>
    %10 = math.exp %9 : vector<8x100xf32>
    %cst_7 = arith.constant dense<0.000000e+00> : vector<8xf32>
    %11 = vector.multi_reduction <add>, %10, %cst_7 [1] : vector<8x100xf32> to vector<8xf32>
    %12 = vector.shape_cast %11 : vector<8xf32> to vector<8x1xf32>
    %13 = vector.broadcast %12 : vector<8x1xf32> to vector<8x100xf32>
    %14 = arith.divf %10, %13 : vector<8x100xf32>
    %cst_8 = arith.constant dense<0.000000e+00> : vector<8x100xf32>
    %15 = tpu.matmul %4, %14, %cst_8 {dimension_numbers = #tpu.dot_dimension_numbers<[0], [0], [1], [1], [0, 1, 1, 1], [], []>} : vector<8x8xf32>, vector<8x100xf32>, vector<8x100xf32> -> vector<8x100xf32>
    %cst_9 = arith.constant dense<0xFF800000> : vector<100xf32>
    %16 = vector.multi_reduction <maximumf>, %14, %cst_9 [0] : vector<8x100xf32> to vector<100xf32>
    %17 = vector.shape_cast %16 : vector<100xf32> to vector<1x100xf32>
    %18 = vector.broadcast %17 : vector<1x100xf32> to vector<8x100xf32>
    %19 = arith.subf %14, %18 : vector<8x100xf32>
    %20 = math.exp %19 : vector<8x100xf32>
    %cst_10 = arith.constant dense<0.000000e+00> : vector<100xf32>
    %21 = vector.multi_reduction <add>, %20, %cst_10 [0] : vector<8x100xf32> to vector<100xf32>
    %22 = vector.shape_cast %21 : vector<100xf32> to vector<1x100xf32>
    %23 = vector.broadcast %22 : vector<1x100xf32> to vector<8x100xf32>
    %24 = arith.divf %20, %23 : vector<8x100xf32>
    %cst_11 = arith.constant dense<0.000000e+00> : vector<8x8xf32>
    %25 = tpu.matmul %24, %15, %cst_11 {dimension_numbers = #tpu.dot_dimension_numbers<[1], [1], [0], [0], [0, 0, 1, 0], [], []>} : vector<8x100xf32>, vector<8x100xf32>, vector<8x8xf32> -> vector<8x8xf32>
    %c0_12 = arith.constant 0 : index
    %c0_13 = arith.constant 0 : index
    %c0_14 = arith.constant 0 : index
    %c0_15 = arith.constant 0 : index
    %26 = vector.load %arg3[%c0_12, %c0_13, %c0_14, %c0_15] : memref<1x1x8x8xf32, #tpu.memory_space<vmem>>, vector<1x1x8x8xf32>
    %27 = vector.shape_cast %26 : vector<1x1x8x8xf32> to vector<8x8xf32>
    %28 = vector.shape_cast %25 : vector<8x8xf32> to vector<1x1x8x8xf32>
    tpu.vector_store %arg3[%c0_12, %c0_13, %c0_14, %c0_15], %28 {strides = array<i32>} : memref<1x1x8x8xf32, #tpu.memory_space<vmem>>, vector<1x1x8x8xf32>,
    return
  }
  func.func @transform_0(%arg0: i32) -> (i32, i32, i32, i32) {
    %c0_i32 = arith.constant 0 : i32
    %c0_i32_0 = arith.constant 0 : i32
    %c0_i32_1 = arith.constant 0 : i32
    %c0_i32_2 = arith.constant 0 : i32
    return %arg0, %c0_i32, %c0_i32_0, %c0_i32_1 : i32, i32, i32, i32
  }
  func.func @transform_1(%arg0: i32) -> (i32, i32, i32, i32) {
    %c0_i32 = arith.constant 0 : i32
    %c0_i32_0 = arith.constant 0 : i32
    %c0_i32_1 = arith.constant 0 : i32
    %c0_i32_2 = arith.constant 0 : i32
    return %arg0, %c0_i32, %c0_i32_0, %c0_i32_1 : i32, i32, i32, i32
  }
  func.func @transform_2(%arg0: i32) -> (i32, i32, i32, i32) {
    %c0_i32 = arith.constant 0 : i32
    %c0_i32_0 = arith.constant 0 : i32
    %c0_i32_1 = arith.constant 0 : i32
    %c0_i32_2 = arith.constant 0 : i32
    return %arg0, %c0_i32, %c0_i32_0, %c0_i32_1 : i32, i32, i32, i32
  }
}

module attributes {stable_mosaic.version = 11 : i64} {
  func.func @_add_skip_kernel(%arg0: i32, %arg1: memref<16x8xf32, #tpu.memory_space<vmem>>, %arg2: memref<16x8xf32, #tpu.memory_space<vmem>>, %arg3: memref<8x16xf32, #tpu.memory_space<vmem>>, %arg4: memref<1x16xf32, #tpu.memory_space<vmem>>, %arg5: memref<16x16xf32, #tpu.memory_space<vmem>>, %arg6: memref<16x8xf32, #tpu.memory_space<vmem>>, %arg7: memref<16x16xf32, #tpu.memory_space<vmem>>) attributes {dimension_semantics = [#tpu.dimension_semantics<parallel>], iteration_bounds = array<i64: 1>, scalar_prefetch = 0 : i64, scratch_operands = 0 : i64, tpu.core_type = #tpu.core_type<tc>, window_params = [{transform_indices = @transform_0, window_bounds = array<i64: 16, 8>}, {transform_indices = @transform_1, window_bounds = array<i64: 16, 8>}, {pipeline_mode = #tpu.pipeline_mode<synchronous>, transform_indices = @transform_2, window_bounds = array<i64: 8, 16>}, {pipeline_mode = #tpu.pipeline_mode<synchronous>, transform_indices = @transform_3, window_bounds = array<i64: 1, 16>}, {transform_indices = @transform_4, window_bounds = array<i64: 16, 16>}, {transform_indices = @transform_5, window_bounds = array<i64: 16, 8>}, {transform_indices = @transform_6, window_bounds = array<i64: 16, 16>}]} {
    %c0 = arith.constant 0 : index
    %c0_0 = arith.constant 0 : index
    %0 = vector.load %arg1[%c0, %c0_0] : memref<16x8xf32, #tpu.memory_space<vmem>>, vector<16x8xf32>
    %c0_1 = arith.constant 0 : index
    %c0_2 = arith.constant 0 : index
    %1 = vector.load %arg2[%c0_1, %c0_2] : memref<16x8xf32, #tpu.memory_space<vmem>>, vector<16x8xf32>
    %2 = arith.addf %0, %1 : vector<16x8xf32>
    %c0_3 = arith.constant 0 : index
    %c0_4 = arith.constant 0 : index
    %3 = vector.load %arg6[%c0_3, %c0_4] : memref<16x8xf32, #tpu.memory_space<vmem>>, vector<16x8xf32>
    tpu.vector_store %arg6[%c0_3, %c0_4], %2 {strides = array<i32>} : memref<16x8xf32, #tpu.memory_space<vmem>>, vector<16x8xf32>,
    %c0_5 = arith.constant 0 : index
    %c0_6 = arith.constant 0 : index
    %4 = vector.load %arg3[%c0_5, %c0_6] : memref<8x16xf32, #tpu.memory_space<vmem>>, vector<8x16xf32>
    %cst = arith.constant dense<0.000000e+00> : vector<16x16xf32>
    %5 = tpu.matmul %2, %4, %cst {dimension_numbers = #tpu.dot_dimension_numbers<[1], [0], [0], [1], [0, 0, 1, 1], [], []>} : vector<16x8xf32>, vector<8x16xf32>, vector<16x16xf32> -> vector<16x16xf32>
    %c0_7 = arith.constant 0 : index
    %c0_8 = arith.constant 0 : index
    %6 = vector.load %arg4[%c0_7, %c0_8] : memref<1x16xf32, #tpu.memory_space<vmem>>, vector<1x16xf32>
    %7 = vector.broadcast %6 : vector<1x16xf32> to vector<16x16xf32>
    %8 = arith.addf %5, %7 : vector<16x16xf32>
    %c0_9 = arith.constant 0 : index
    %c0_10 = arith.constant 0 : index
    %9 = vector.load %arg5[%c0_9, %c0_10] : memref<16x16xf32, #tpu.memory_space<vmem>>, vector<16x16xf32>
    %10 = arith.addf %8, %9 : vector<16x16xf32>
    %c0_11 = arith.constant 0 : index
    %c0_12 = arith.constant 0 : index
    %11 = vector.load %arg7[%c0_11, %c0_12] : memref<16x16xf32, #tpu.memory_space<vmem>>, vector<16x16xf32>
    tpu.vector_store %arg7[%c0_11, %c0_12], %10 {strides = array<i32>} : memref<16x16xf32, #tpu.memory_space<vmem>>, vector<16x16xf32>,
    return
  }
  func.func @transform_0(%arg0: i32) -> (i32, i32) {
    %c0_i32 = arith.constant 0 : i32
    %c0_i32_0 = arith.constant 0 : i32
    return %arg0, %c0_i32 : i32, i32
  }
  func.func @transform_1(%arg0: i32) -> (i32, i32) {
    %c0_i32 = arith.constant 0 : i32
    %c0_i32_0 = arith.constant 0 : i32
    return %arg0, %c0_i32 : i32, i32
  }
  func.func @transform_2(%arg0: i32) -> (i32, i32) {
    %c0_i32 = arith.constant 0 : i32
    %c0_i32_0 = arith.constant 0 : i32
    %c0_i32_1 = arith.constant 0 : i32
    return %c0_i32, %c0_i32_0 : i32, i32
  }
  func.func @transform_3(%arg0: i32) -> (i32, i32) {
    %c0_i32 = arith.constant 0 : i32
    %c0_i32_0 = arith.constant 0 : i32
    %c0_i32_1 = arith.constant 0 : i32
    return %c0_i32, %c0_i32_0 : i32, i32
  }
  func.func @transform_4(%arg0: i32) -> (i32, i32) {
    %c0_i32 = arith.constant 0 : i32
    %c0_i32_0 = arith.constant 0 : i32
    return %arg0, %c0_i32 : i32, i32
  }
  func.func @transform_5(%arg0: i32) -> (i32, i32) {
    %c0_i32 = arith.constant 0 : i32
    %c0_i32_0 = arith.constant 0 : i32
    return %arg0, %c0_i32 : i32, i32
  }
  func.func @transform_6(%arg0: i32) -> (i32, i32) {
    %c0_i32 = arith.constant 0 : i32
    %c0_i32_0 = arith.constant 0 : i32
    return %arg0, %c0_i32 : i32, i32
  }
}

</mosaic_0001>

<bundles_post_ra>
// kernel: mls_classifier_forward.9
= control target key start
LH: loop header
LB: loop body
LE: loop exit
PB: predicated region body
PF: predicated region fallthrough
CT: control target
= control target key end

     0   :  { %vm92_vm0 = vcmask 1041408   ;;  %vm37_vm1 = vcmask 15360   ;;  %vm167_vm2 = vcmask 64512   ;;  %s383_s1 = inlined_call_operand.vmem [shape: f32[2,8], index: 1, kind: input, shape index: {}]   ;;  %s384_s0 = inlined_call_operand.vmem [shape: f32[144,2], index: 0, kind: input, shape index: {}]   ;;  %s385_s2 = inlined_call_operand.vmem [shape: f32[1,8], index: 2, kind: input, shape index: {}]   ;;  %s386_s3 = inlined_call_operand.vmem [shape: f32[144,8], index: 3, kind: output, shape index: {}]  }
   0x1   :  { %v32_v0 = vld [vmem:[%s383_s1] sm:$0x3]  ;;  %v24_v1 = vld [vmem:[%s384_s0 + $0x50] sm:$0xff]  ;;  %v19_v3 = vld [vmem:[%s384_s0 + $0x28] sm:$0xff] }
   0x2   :  { %v14_v2 = vld [vmem:[%s384_s0] sm:$0xff]  ;;  %210 = vmatpush.msk.msra.mxu2 %vm92_vm0, %v32_v0  ;;  %190 = vmatpush.msk.msra.mxu0 %vm92_vm0, %v32_v0  ;;  %v29_v4 = vld [vmem:[%s384_s0 + $0x78] sm:$0xff]  ;;  %v15_v6 = vld [vmem:[%s384_s0 + $0x8] sm:$0xff] }
   0x3   :  { %201 = vmatmul.msk.f32.vlgmr.msra.gmra.mxu2 %vm37_vm1, %v24_v1  ;;  %209 = vmatpush.msk.msra.mxu1 %vm92_vm0, %v32_v0  ;;  %v25_v5 = vld [vmem:[%s384_s0 + $0x58] sm:$0xff]  ;;  %v20_v7 = vld [vmem:[%s384_s0 + $0x30] sm:$0xff]  ;;  %v30_v8 = vld [vmem:[%s384_s0 + $0x80] sm:$0xff] }
   0x4   :  { %191 = vmatmul.msk.f32.vlgmr.msra.gmra.mxu0 %vm37_vm1, %v14_v2  ;;  %196 = vmatmul.msk.f32.vlgmr.msra.gmra.mxu1 %vm37_vm1, %v19_v3  ;;  %v26_v9 = vld [vmem:[%s384_s0 + $0x60] sm:$0xff]  ;;  %v16_v10 = vld [vmem:[%s384_s0 + $0x10] sm:$0xff]  ;;  %v21_v11 = vld [vmem:[%s384_s0 + $0x38] sm:$0xff] }
   0x5   :  { %211 = vmatpush.msk.msra.mxu3 %vm92_vm0, %v32_v0  ;;  %v31_v12 = vld [vmem:[%s384_s0 + $0x88] sm:$0xff]  ;;  %v17_v14 = vld [vmem:[%s384_s0 + $0x18] sm:$0xff]  ;;  %v22_v15 = vld [vmem:[%s384_s0 + $0x40] sm:$0xff] }
   0x6   :  { %206 = vmatmul.msk.f32.vlgmr.msra.gmra.mxu3 %vm37_vm1, %v29_v4  ;;  %v27_v13 = vld [vmem:[%s384_s0 + $0x68] sm:$0xff]  ;;  %v28_v16 = vld [vmem:[%s384_s0 + $0x70] sm:$0xff]  ;;  %v18_v17 = vld [vmem:[%s384_s0 + $0x20] sm:$0xff] }
   0x7   :  { %v23_v18 = vld [vmem:[%s384_s0 + $0x48] sm:$0xff]  ;;  %v212_v19 = vld [vmem:[%s385_s2] ss:$0 sm:$0xff] }
   0xb   :  { %202 = vmatmul.msk.f32.gmra.mxu2 %vm37_vm1, %v25_v5 }
   0xc   :  { %192 = vmatmul.msk.f32.gmra.mxu0 %vm37_vm1, %v15_v6  ;;  %197 = vmatmul.msk.f32.gmra.mxu1 %vm37_vm1, %v20_v7 }
   0xe   :  { %207 = vmatmul.msk.f32.gmra.mxu3 %vm37_vm1, %v30_v8 }
  0x13   :  { %203 = vmatmul.msk.f32.gmra.mxu2 %vm37_vm1, %v26_v9 }
  0x14   :  { %193 = vmatmul.msk.f32.gmra.mxu0 %vm37_vm1, %v16_v10  ;;  %198 = vmatmul.msk.f32.gmra.mxu1 %vm37_vm1, %v21_v11 }
  0x16   :  { %208 = vmatmul.msk.f32.gmra.mxu3 %vm37_vm1, %v31_v12 }
  0x1b   :  { %204 = vmatmul.msk.f32.gmra.mxu2 %vm37_vm1, %v27_v13 }
  0x1c   :  { %194 = vmatmul.msk.f32.gmra.mxu0 %vm37_vm1, %v17_v14  ;;  %199 = vmatmul.msk.f32.gmra.mxu1 %vm37_vm1, %v22_v15 }
  0x23   :  { %205 = vmatmul.msk.f32.gmra.mxu2 %vm37_vm1, %v28_v16 }
  0x24   :  { %195 = vmatmul.msk.f32.gmra.mxu0 %vm37_vm1, %v18_v17  ;;  %200 = vmatmul.msk.f32.gmra.mxu1 %vm37_vm1, %v23_v18 }
  0x81   :  { %v113_v20 = vpop.f32.mrf.mxu0  ;;  %v128_v21 = vpop.f32.mrf.mxu1 }
  0x82   :  { %v114_v22 = vadd.f32 %v212_v19, %v113_v20  ;;  %v129_v23 = vadd.f32 %v212_v19, %v128_v21 }
  0x84   :  { %168 = vst.msk [vmem:[%s386_s3] sm:$0xff] %vm167_vm2, %v114_v22 }
  0x85   :  { %173 = vst.msk [vmem:[%s386_s3 + $0x28] sm:$0xff] %vm167_vm2, %v129_v23 }
  0x86   :  { %v143_v24 = vpop.f32.mrf.mxu2 }
  0x87   :  { %v144_v25 = vadd.f32 %v212_v19, %v143_v24 }
  0x89   :  { %178 = vst.msk [vmem:[%s386_s3 + $0x50] sm:$0xff] %vm167_vm2, %v144_v25  ;;  %v116_v26 = vpop.f32.mrf.mxu0  ;;  %v131_v27 = vpop.f32.mrf.mxu1 }
  0x8a   :  { %v117_v28 = vadd.f32 %v212_v19, %v116_v26  ;;  %v132_v29 = vadd.f32 %v212_v19, %v131_v27  ;;  %v158_v30 = vpop.f32.mrf.mxu3 }
  0x8b   :  { %v159_v31 = vadd.f32 %v212_v19, %v158_v30 }
  0x8c   :  { %169 = vst.msk [vmem:[%s386_s3 + $0x8] sm:$0xff] %vm167_vm2, %v117_v28 }
  0x8d   :  { %174 = vst.msk [vmem:[%s386_s3 + $0x30] sm:$0xff] %vm167_vm2, %v132_v29 }
  0x8e   :  { %v146_v32 = vpop.f32.mrf.mxu2  ;;  %183 = vst.msk [vmem:[%s386_s3 + $0x78] sm:$0xff] %vm167_vm2, %v159_v31 }
  0x8f   :  { %v147_v33 = vadd.f32 %v212_v19, %v146_v32 }
  0x91   :  { %179 = vst.msk [vmem:[%s386_s3 + $0x58] sm:$0xff] %vm167_vm2, %v147_v33  ;;  %v119_v34 = vpop.f32.mrf.mxu0  ;;  %v134_v35 = vpop.f32.mrf.mxu1 }
  0x92   :  { %v120_v36 = vadd.f32 %v212_v19, %v119_v34  ;;  %v135_v37 = vadd.f32 %v212_v19, %v134_v35  ;;  %v161_v38 = vpop.f32.mrf.mxu3 }
  0x93   :  { %v162_v39 = vadd.f32 %v212_v19, %v161_v38 }
  0x94   :  { %170 = vst.msk [vmem:[%s386_s3 + $0x10] sm:$0xff] %vm167_vm2, %v120_v36 }
  0x95   :  { %175 = vst.msk [vmem:[%s386_s3 + $0x38] sm:$0xff] %vm167_vm2, %v135_v37 }
  0x96   :  { %v149_v40 = vpop.f32.mrf.mxu2  ;;  %184 = vst.msk [vmem:[%s386_s3 + $0x80] sm:$0xff] %vm167_vm2, %v162_v39 }
  0x97   :  { %v150_v41 = vadd.f32 %v212_v19, %v149_v40 }
  0x99   :  { %180 = vst.msk [vmem:[%s386_s3 + $0x60] sm:$0xff] %vm167_vm2, %v150_v41  ;;  %v122_v42 = vpop.f32.mrf.mxu0  ;;  %v137_v43 = vpop.f32.mrf.mxu1 }
  0x9a   :  { %v123_v44 = vadd.f32 %v212_v19, %v122_v42  ;;  %v138_v45 = vadd.f32 %v212_v19, %v137_v43  ;;  %v164_v46 = vpop.f32.mrf.mxu3 }
  0x9b   :  { %v165_v47 = vadd.f32 %v212_v19, %v164_v46 }
  0x9c   :  { %171 = vst.msk [vmem:[%s386_s3 + $0x18] sm:$0xff] %vm167_vm2, %v123_v44 }
  0x9d   :  { %176 = vst.msk [vmem:[%s386_s3 + $0x40] sm:$0xff] %vm167_vm2, %v138_v45 }
  0x9e   :  { %v152_v48 = vpop.f32.mrf.mxu2  ;;  %185 = vst.msk [vmem:[%s386_s3 + $0x88] sm:$0xff] %vm167_vm2, %v165_v47 }
  0x9f   :  { %v153_v49 = vadd.f32 %v212_v19, %v152_v48 }
  0xa1   :  { %181 = vst.msk [vmem:[%s386_s3 + $0x68] sm:$0xff] %vm167_vm2, %v153_v49  ;;  %v125_v50 = vpop.f32.mrf.mxu0  ;;  %v140_v51 = vpop.f32.mrf.mxu1 }
  0xa2   :  { %v126_v52 = vadd.f32 %v212_v19, %v125_v50  ;;  %v141_v53 = vadd.f32 %v212_v19, %v140_v51 }
  0xa4   :  { %172 = vst.msk [vmem:[%s386_s3 + $0x20] sm:$0xff] %vm167_vm2, %v126_v52 }
  0xa5   :  { %177 = vst.msk [vmem:[%s386_s3 + $0x48] sm:$0xff] %vm167_vm2, %v141_v53 }
  0xa6   :  { %v155_v54 = vpop.f32.mrf.mxu2 }
  0xa7   :  { %v156_v55 = vadd.f32 %v212_v19, %v155_v54 }
  0xa9   :  { %182 = vst.msk [vmem:[%s386_s3 + $0x70] sm:$0xff] %vm167_vm2, %v156_v55 }

// kernel: mls_classifier_forward.11
= control target key start
LH: loop header
LB: loop body
LE: loop exit
PB: predicated region body
PF: predicated region fallthrough
CT: control target
= control target key end

     0   :  { %vm25_vm0 = vcmask 195584   ;;  %vm105_vm9 = vcmask 64512   ;;  %s205_s1 = inlined_call_operand.vmem [shape: f32[24,24], index: 1, kind: input, shape index: {}]   ;;  %s206_s0 = inlined_call_operand.vmem [shape: f32[16,24], index: 0, kind: input, shape index: {}]   ;;  %s207_s2 = inlined_call_operand.vmem [shape: f32[1,24], index: 2, kind: input, shape index: {}]   ;;  %s208_s4 = inlined_call_operand.vmem [shape: f32[16,8], index: 4, kind: output, shape index: {1}]   ;;  %s209_s3 = inlined_call_operand.vmem [shape: f32[16,8], index: 3, kind: output, shape index: {0}]  }
   0x1   :  { %v20_v0 = vld [vmem:[%s205_s1 + $0x10] sm:$0xff]  ;;  %v19_v1 = vld [vmem:[%s205_s1 + $0x8] sm:$0xff]  ;;  %v18_v2 = vld [vmem:[%s205_s1] sm:$0xff]  ;;  %s148_s1 = smov 112  }
   0x2   :  { %45 = vmatpush.msra.mxu0 %v20_v0  ;;  %130 = vmatpush.msra.mxu1 %v20_v0  ;;  %v16_v3 = vld [vmem:[%s206_s0] sm:$0xff]  ;;  %v17_v4 = vld [vmem:[%s206_s0 + $0x8] sm:$0xff]  ;;  %s149_s0 = smov 120  }
   0x3   :  { %v135_v5 = vld [vmem:[%s207_s2] ss:$0 sm:$0xff] }
   0x4   :  { %46 = vmatpush.msra.mxu0 %v19_v1  ;;  %131 = vmatpush.msra.mxu1 %v19_v1 }
   0x6   :  { %47 = vmatpush.msra.mxu0 %v18_v2  ;;  %132 = vmatpush.msra.mxu1 %v18_v2 }
   0x7   :  { %126 = vmatmul.msk.f32.vlgmr.msra.gmra.mxu0 %vm25_vm0, %v16_v3  ;;  %127 = vmatmul.msk.f32.vlgmr.msra.gmra.mxu1 %vm25_vm0, %v17_v4 }
  0x84   :  { %v49_v6 = vpop.f32.mrf.mxu0  ;;  %v52_v7 = vpop.f32.mrf.mxu1 }
  0x85   :  { %v50_v8 = vadd.f32 %v135_v5, %v49_v6  ;;  %v53_v9 = vadd.f32 %v135_v5, %v52_v7 }
  0x87   :  { %v128_v10 = vmul.f32 -1.442695, %v50_v8  ;;  %v129_v11 = vmul.f32 -1.442695, %v53_v9  ;;  %110 = vrot.lane.b32.xlu1 %v50_v8, %s148_s1 }
  0x89   :  { %136 = vpow2.f32 %v128_v10 }
  0x8a   :  { %138 = vpow2.f32 %v129_v11 }
  0x8f   :  { %v137_v12 = vpop.eup %136  ;;  %112 = vrot.lane.b32.xlu1 %v53_v9, %s148_s1 }
  0x90   :  { %v139_v13 = vpop.eup %138  ;;  %v63_v14 = vadd.f32 1.0, %v137_v12 }
  0x91   :  { %v64_v15 = vadd.f32 1.0, %v139_v13 }
  0x92   :  { %140 = vrcp.f32 %v63_v14  ;;  %v76_v21 = vand.u32 2147483648, %v63_v14  ;;  %v74_v24 = vand.u32 2147483647, %v63_v14  ;;  %vm70_vm2 = vweird.f32 %v63_v14 }
  0x93   :  { %142 = vrcp.f32 %v64_v15  ;;  %vm85_vm5 = vweird.f32 %v64_v15  ;;  %v91_v31 = vand.u32 2147483648, %v64_v15  ;;  %v89_v32 = vand.u32 2147483647, %v64_v15 }
  0x94   :  { %v77_v27 = vor.u32 1.1754944e-38, %v76_v21  ;;  %vm75_vm4 = vcmp.eq.f32.partialorder %v74_v24, 8.507059e+37  ;;  %144 = vtanh.f32 %v50_v8 }
  0x95   :  { %v92_v34 = vor.u32 1.1754944e-38, %v91_v31  ;;  %vm90_vm8 = vcmp.eq.f32.partialorder %v89_v32, 8.507059e+37  ;;  %146 = vtanh.f32 %v53_v9 }
  0x98   :  { %v141_v16 = vpop.eup %140 }
  0x99   :  { %v143_v17 = vpop.eup %142  ;;  %v66_v18 = vmul.f32 %v141_v16, %v63_v14  ;;  %vm71_vm1 = vweird.f32 %v141_v16 }
  0x9a   :  { %v81_v19 = vmul.f32 %v143_v17, %v64_v15  ;;  %vm72_vm3 = vmor %vm70_vm2, %vm71_vm1  ;;  %vm86_vm6 = vweird.f32 %v143_v17  ;;  %v145_v38 = vpop.eup %144 }
  0x9b   :  { %v67_v20 = vsub.f32 1.0, %v66_v18  ;;  %vm87_vm7 = vmor %vm85_vm5, %vm86_vm6  ;;  %v147_v41 = vpop.eup %146 }
  0x9c   :  { %v82_v22 = vsub.f32 1.0, %v81_v19 }
  0x9d   :  { %v68_v23 = vmul.f32 %v141_v16, %v67_v20 }
  0x9e   :  { %v83_v26 = vmul.f32 %v143_v17, %v82_v22 }
  0x9f   :  { %v69_v25 = vadd.f32 %v141_v16, %v68_v23 }
  0xa0   :  { %v84_v30 = vadd.f32 %v143_v17, %v83_v26 }
  0xa1   :  { %v73_v28 = vsel %vm72_vm3, %v141_v16, %v69_v25 }
  0xa2   :  { %v78_v29 = vsel %vm75_vm4, %v77_v27, %v73_v28  ;;  %v88_v33 = vsel %vm87_vm7, %v143_v17, %v84_v30 }
  0xa3   :  { %97 = vrot.lane.b32.xlu0 %v78_v29, %s149_s0  ;;  %v93_v35 = vsel %vm90_vm8, %v92_v34, %v88_v33 }
  0xab   :  { %99 = vrot.lane.b32.xlu0 %v93_v35, %s149_s0 }
  0xf9   :  { %v111_v36 = vpop.permute.xlu1 %110 }
  0xfa   :  { %116 = vst.msk [vmem:[%s208_s4] sm:$0xff] %vm105_vm9, %v111_v36 }
 0x101   :  { %v113_v37 = vpop.permute.xlu1 %112 }
 0x102   :  { %117 = vst.msk [vmem:[%s208_s4 + $0x8] sm:$0xff] %vm105_vm9, %v113_v37 }
 0x115   :  { %v98_v39 = vpop.permute.xlu0 %97 }
 0x116   :  { %v103_v40 = vmul.f32 %v145_v38, %v98_v39 }
 0x118   :  { %106 = vst.msk [vmem:[%s209_s3] sm:$0xff] %vm105_vm9, %v103_v40 }
 0x11d   :  { %v100_v42 = vpop.permute.xlu0 %99 }
 0x11e   :  { %v104_v43 = vmul.f32 %v147_v41, %v100_v42 }
 0x120   :  { %107 = vst.msk [vmem:[%s209_s3 + $0x8] sm:$0xff] %vm105_vm9, %v104_v43 }

// kernel: mls_classifier_forward.10
= control target key start
LH: loop header
LB: loop body
LE: loop exit
PB: predicated region body
PF: predicated region fallthrough
CT: control target
= control target key end

     0   :  { %vm38_vm0 = vcmask 195584   ;;  %s625_s1 = inlined_call_operand.vmem [shape: f32[24,24], index: 1, kind: input, shape index: {}]   ;;  %s626_s0 = inlined_call_operand.vmem [shape: f32[48,24], index: 0, kind: input, shape index: {}]   ;;  %s627_s2 = inlined_call_operand.vmem [shape: f32[1,24], index: 2, kind: input, shape index: {}]   ;;  %s628_s4 = inlined_call_operand.vmem [shape: f32[1,16], index: 4, kind: input, shape index: {}]   ;;  %s629_s3 = inlined_call_operand.vmem [shape: f32[8,16], index: 3, kind: input, shape index: {}]   ;;  %s630_s6 = inlined_call_operand.vmem [shape: f32[48,8], index: 6, kind: output, shape index: {0}]   ;;  %s631_s5 = inlined_call_operand.vmem [shape: f32[48,16], index: 5, kind: input, shape index: {}]   ;;  %s632_s7 = inlined_call_operand.vmem [shape: f32[48,16], index: 7, kind: output, shape index: {1}]  }
   0x1   :  { %v33_v0 = vld [vmem:[%s625_s1 + $0x10] sm:$0xff]  ;;  %v32_v1 = vld [vmem:[%s625_s1 + $0x8] sm:$0xff]  ;;  %v31_v2 = vld [vmem:[%s625_s1] sm:$0xff] }
   0x2   :  { %70 = vmatpush.msra.mxu0 %v33_v0  ;;  %382 = vmatpush.msra.mxu2 %v33_v0  ;;  %v25_v3 = vld [vmem:[%s626_s0] sm:$0xff]  ;;  %v28_v4 = vld [vmem:[%s626_s0 + $0x18] sm:$0xff]  ;;  %v26_v5 = vld [vmem:[%s626_s0 + $0x8] sm:$0xff] }
   0x3   :  { %v29_v6 = vld [vmem:[%s626_s0 + $0x20] sm:$0xff]  ;;  %v27_v7 = vld [vmem:[%s626_s0 + $0x10] sm:$0xff]  ;;  %v30_v8 = vld [vmem:[%s626_s0 + $0x28] sm:$0xff]  ;;  %s426_s0 = smov 112  }
   0x4   :  { %71 = vmatpush.msra.mxu0 %v32_v1  ;;  %383 = vmatpush.msra.mxu2 %v32_v1  ;;  %v388_v9 = vld [vmem:[%s627_s2] ss:$0 sm:$0xff]  ;;  %s427_s2 = smov 120  }
   0x6   :  { %72 = vmatpush.msra.mxu0 %v31_v2  ;;  %384 = vmatpush.msra.mxu2 %v31_v2 }
   0x7   :  { %364 = vmatmul.msk.f32.vlgmr.msra.gmra.mxu0 %vm38_vm0, %v25_v3  ;;  %367 = vmatmul.msk.f32.vlgmr.msra.gmra.mxu2 %vm38_vm0, %v28_v4 }
   0xf   :  { %365 = vmatmul.msk.f32.gmra.mxu0 %vm38_vm0, %v26_v5  ;;  %368 = vmatmul.msk.f32.gmra.mxu2 %vm38_vm0, %v29_v6 }
  0x17   :  { %366 = vmatmul.msk.f32.gmra.mxu0 %vm38_vm0, %v27_v7  ;;  %369 = vmatmul.msk.f32.gmra.mxu2 %vm38_vm0, %v30_v8 }
  0x84   :  { %v74_v10 = vpop.f32.mrf.mxu0 }
  0x85   :  { %v498_v11 = vadd.f32 %v388_v9, %v74_v10 }
  0x87   :  { %v370_v12 = vmul.f32 -1.442695, %v498_v11 }
  0x89   :  { %390 = vpow2.f32 %v370_v12 }
  0x8a   :  { %v83_v13 = vpop.f32.mrf.mxu2 }
  0x8b   :  { %v506_v19 = vadd.f32 %v388_v9, %v83_v13 }
  0x8c   :  { %v77_v14 = vpop.f32.mrf.mxu0 }
  0x8d   :  { %v501_v15 = vadd.f32 %v388_v9, %v77_v14  ;;  %v373_v22 = vmul.f32 -1.442695, %v506_v19 }
  0x8f   :  { %v391_v16 = vpop.eup %390  ;;  %v371_v17 = vmul.f32 -1.442695, %v501_v15  ;;  %250 = vrot.lane.b32.xlu2 %v501_v15, %s426_s0 }
  0x90   :  { %v116_v18 = vadd.f32 1.0, %v391_v16 }
  0x91   :  { %392 = vpow2.f32 %v371_v17 }
  0x92   :  { %394 = vrcp.f32 %v116_v18  ;;  %v86_v20 = vpop.f32.mrf.mxu2  ;;  %v133_v34 = vand.u32 2147483648, %v116_v18  ;;  %v131_v38 = vand.u32 2147483647, %v116_v18  ;;  %vm127_vm2 = vweird.f32 %v116_v18 }
  0x93   :  { %v508_v21 = vadd.f32 %v388_v9, %v86_v20 }
  0x94   :  { %v80_v23 = vpop.f32.mrf.mxu0  ;;  %v134_v43 = vor.u32 1.1754944e-38, %v133_v34  ;;  %vm132_vm4 = vcmp.eq.f32.partialorder %v131_v38, 8.507059e+37 }
  0x95   :  { %v374_v24 = vmul.f32 -1.442695, %v508_v21  ;;  %v512_v25 = vadd.f32 %v388_v9, %v80_v23 }
  0x97   :  { %v393_v26 = vpop.eup %392  ;;  %396 = vpow2.f32 %v374_v24  ;;  %v372_v27 = vmul.f32 -1.442695, %v512_v25  ;;  %256 = vrot.lane.b32.xlu2 %v508_v21, %s426_s0 }
  0x98   :  { %v395_v28 = vpop.eup %394  ;;  %398 = vpow2.f32 %v373_v22  ;;  %v117_v29 = vadd.f32 1.0, %v393_v26 }
  0x99   :  { %v123_v30 = vmul.f32 %v395_v28, %v116_v18  ;;  %vm128_vm1 = vweird.f32 %v395_v28 }
  0x9a   :  { %400 = vrcp.f32 %v117_v29  ;;  %v89_v31 = vpop.f32.mrf.mxu2  ;;  %vm129_vm3 = vmor %vm127_vm2, %vm128_vm1  ;;  %v148_v51 = vand.u32 2147483648, %v117_v29  ;;  %v146_v54 = vand.u32 2147483647, %v117_v29  ;;  %vm142_vm6 = vweird.f32 %v117_v29 }
  0x9b   :  { %402 = vpow2.f32 %v372_v27  ;;  %v517_v32 = vadd.f32 %v388_v9, %v89_v31  ;;  %v124_v33 = vsub.f32 1.0, %v123_v30 }
  0x9c   :  { %v149_v59 = vor.u32 1.1754944e-38, %v148_v51  ;;  %vm147_vm8 = vcmp.eq.f32.partialorder %v146_v54, 8.507059e+37 }
  0x9d   :  { %v397_v35 = vpop.eup %396  ;;  %v375_v36 = vmul.f32 -1.442695, %v517_v32  ;;  %v125_v37 = vmul.f32 %v395_v28, %v124_v33 }
  0x9e   :  { %v399_v39 = vpop.eup %398  ;;  %v120_v40 = vadd.f32 1.0, %v397_v35 }
  0x9f   :  { %404 = vpow2.f32 %v375_v36  ;;  %252 = vrot.lane.b32.xlu2 %v512_v25, %s426_s0  ;;  %v126_v41 = vadd.f32 %v395_v28, %v125_v37  ;;  %v522_v45 = vadd.f32 1.0, %v399_v39 }
  0xa0   :  { %v401_v42 = vpop.eup %400  ;;  %406 = vrcp.f32 %v120_v40  ;;  %v193_v3 = vand.u32 2147483648, %v120_v40  ;;  %vm187_vm10 = vweird.f32 %v120_v40  ;;  %v191_v5 = vand.u32 2147483647, %v120_v40 }
  0xa1   :  { %v403_v44 = vpop.eup %402  ;;  %v130_v46 = vsel %vm129_vm3, %v395_v28, %v126_v41  ;;  %v138_v47 = vmul.f32 %v401_v42, %v117_v29  ;;  %vm143_vm5 = vweird.f32 %v401_v42  ;;  %v178_v37 = vand.u32 2147483648, %v522_v45 }
  0xa2   :  { %v118_v48 = vadd.f32 1.0, %v403_v44  ;;  %v135_v49 = vsel %vm132_vm4, %v134_v43, %v130_v46  ;;  %vm144_vm7 = vmor %vm142_vm6, %vm143_vm5  ;;  %v194_v16 = vor.u32 1.1754944e-38, %v193_v3  ;;  %vm192_vm13 = vcmp.eq.f32.partialorder %v191_v5, 8.507059e+37  ;;  %v337_v5 = vld [vmem:[%s631_s5] sm:$0xff] }
  0xa3   :  { %218 = vrot.lane.b32.xlu0 %v135_v49, %s427_s2  ;;  %v139_v50 = vsub.f32 1.0, %v138_v47  ;;  %vm172_vm6 = vweird.f32 %v522_v45  ;;  %v176_v38 = vand.u32 2147483647, %v522_v45 }
  0xa4   :  { %408 = vrcp.f32 %v118_v48  ;;  %v161_v8 = vand.u32 2147483647, %v118_v48  ;;  %v163_v9 = vand.u32 2147483648, %v118_v48  ;;  %vm157_vm14 = vweird.f32 %v118_v48 }
  0xa5   :  { %v405_v52 = vpop.eup %404  ;;  %410 = vrcp.f32 %v522_v45  ;;  %v140_v53 = vmul.f32 %v401_v42, %v139_v50 }
  0xa6   :  { %v407_v55 = vpop.eup %406  ;;  %v121_v56 = vadd.f32 1.0, %v405_v52  ;;  %v164_v22 = vor.u32 1.1754944e-38, %v163_v9  ;;  %vm162_vm0 = vcmp.eq.f32.partialorder %v161_v8, 8.507059e+37  ;;  %v338_v9 = vld [vmem:[%s631_s5 + $0x8] sm:$0xff] }
  0xa7   :  { %254 = vrot.lane.b32.xlu2 %v506_v19, %s426_s0  ;;  %v141_v57 = vadd.f32 %v401_v42, %v140_v53  ;;  %v183_v58 = vmul.f32 %v407_v55, %v120_v40  ;;  %vm188_vm9 = vweird.f32 %v407_v55  ;;  %v179_v40 = vor.u32 1.1754944e-38, %v178_v37 }
  0xa8   :  { %412 = vrcp.f32 %v121_v56  ;;  %vm189_vm11 = vmor %vm187_vm10, %vm188_vm9  ;;  %v208_v28 = vand.u32 2147483648, %v121_v56  ;;  %vm202_vm2 = vweird.f32 %v121_v56  ;;  %v206_v30 = vand.u32 2147483647, %v121_v56 }
  0xa9   :  { %v145_v60 = vsel %vm144_vm7, %v401_v42, %v141_v57  ;;  %v184_v61 = vsub.f32 1.0, %v183_v58  ;;  %v279_v42 = vld [vmem:[%s629_s3] sm:$0xff]  ;;  %414 = vtanh.f32 %v498_v11  ;;  %vm272_vm9 = vcmask 64512  }
  0xaa   :  { %v409_v62 = vpop.eup %408  ;;  %v150_v63 = vsel %vm147_vm8, %v149_v59, %v145_v60  ;;  %v209_v34 = vor.u32 1.1754944e-38, %v208_v28  ;;  %vm207_vm4 = vcmp.eq.f32.partialorder %v206_v30, 8.507059e+37  ;;  %vm177_vm8 = vcmp.eq.f32.partialorder %v176_v38, 8.507059e+37  ;;  %317 = vmatpush.msra.mxu1 %v279_v42  ;;  %385 = vmatpush.msra.mxu3 %v279_v42 }
  0xab   :  { %v411_v0 = vpop.eup %410  ;;  %220 = vrot.lane.b32.xlu1 %v150_v63, %s427_s2  ;;  %248 = vrot.lane.b32.xlu0 %v498_v11, %s426_s0  ;;  %v185_v1 = vmul.f32 %v407_v55, %v184_v61  ;;  %v153_v2 = vmul.f32 %v409_v62, %v118_v48  ;;  %vm158_vm12 = vweird.f32 %v409_v62  ;;  %416 = vtanh.f32 %v501_v15 }
  0xac   :  { %v168_v10 = vmul.f32 %v411_v0, %v522_v45  ;;  %vm159_vm15 = vmor %vm157_vm14, %vm158_vm12  ;;  %vm173_vm5 = vweird.f32 %v411_v0  ;;  %418 = vtanh.f32 %v508_v21  ;;  %vm349_vm10 = vcmask 130048  }
  0xad   :  { %v186_v4 = vadd.f32 %v407_v55, %v185_v1  ;;  %v154_v6 = vsub.f32 1.0, %v153_v2  ;;  %vm174_vm7 = vmor %vm172_vm6, %vm173_vm5  ;;  %420 = vtanh.f32 %v512_v25 }
  0xae   :  { %v413_v7 = vpop.eup %412  ;;  %v169_v23 = vsub.f32 1.0, %v168_v10  ;;  %422 = vtanh.f32 %v517_v32 }
  0xaf   :  { %v190_v12 = vsel %vm189_vm11, %v407_v55, %v186_v4  ;;  %v155_v13 = vmul.f32 %v409_v62, %v154_v6  ;;  %v198_v14 = vmul.f32 %v413_v7, %v121_v56  ;;  %vm203_vm1 = vweird.f32 %v413_v7  ;;  %v415_v45 = vpop.eup %414 }
  0xb0   :  { %v195_v20 = vsel %vm192_vm13, %v194_v16, %v190_v12  ;;  %vm204_vm3 = vmor %vm202_vm2, %vm203_vm1  ;;  %v170_v33 = vmul.f32 %v411_v0, %v169_v23  ;;  %424 = vtanh.f32 %v506_v19  ;;  %v389_v19 = vld [vmem:[%s628_s4] ss:$0 sm:$0xff] }
  0xb1   :  { %v156_v17 = vadd.f32 %v409_v62, %v155_v13  ;;  %v199_v18 = vsub.f32 1.0, %v198_v14  ;;  %v417_v47 = vpop.eup %416  ;;  %v339_v14 = vld [vmem:[%s631_s5 + $0x10] sm:$0xff] }
  0xb2   :  { %v171_v36 = vadd.f32 %v411_v0, %v170_v33  ;;  %v419_v11 = vpop.eup %418 }
  0xb3   :  { %226 = vrot.lane.b32.xlu1 %v195_v20, %s427_s2  ;;  %v160_v24 = vsel %vm159_vm15, %v409_v62, %v156_v17  ;;  %v200_v26 = vmul.f32 %v413_v7, %v199_v18  ;;  %v421_v21 = vpop.eup %420  ;;  %v341_v17 = vld [vmem:[%s631_s5 + $0x20] sm:$0xff] }
  0xb4   :  { %v165_v27 = vsel %vm162_vm0, %v164_v22, %v160_v24  ;;  %v175_v39 = vsel %vm174_vm7, %v411_v0, %v171_v36 }
  0xb5   :  { %222 = vrot.lane.b32.xlu0 %v165_v27, %s427_s2  ;;  %v201_v29 = vadd.f32 %v413_v7, %v200_v26  ;;  %v180_v41 = vsel %vm177_vm8, %v179_v40, %v175_v39  ;;  %v342_v26 = vld [vmem:[%s631_s5 + $0x28] sm:$0xff] }
  0xb7   :  { %v205_v31 = vsel %vm204_vm3, %v413_v7, %v201_v29  ;;  %v340_v29 = vld [vmem:[%s631_s5 + $0x18] sm:$0xff] }
  0xb8   :  { %v210_v35 = vsel %vm207_vm4, %v209_v34, %v205_v31 }
  0xbb   :  { %228 = vrot.lane.b32.xlu1 %v210_v35, %s427_s2 }
  0xbd   :  { %258 = vrot.lane.b32.xlu0 %v517_v32, %s426_s0  ;;  %v423_v32 = vpop.eup %422 }
  0xbe   :  { %v425_v63 = vpop.eup %424 }
  0xc3   :  { %224 = vrot.lane.b32.xlu1 %v180_v41, %s427_s2 }
  0xe9   :  { %v251_v43 = vpop.permute.xlu2 %250 }
  0xf1   :  { %v257_v52 = vpop.permute.xlu2 %256 }
  0xf9   :  { %v253_v58 = vpop.permute.xlu2 %252 }
 0x101   :  { %v255_v2 = vpop.permute.xlu2 %254 }
 0x115   :  { %v219_v44 = vpop.permute.xlu0 %218 }
 0x116   :  { %v236_v46 = vmul.f32 %v415_v45, %v219_v44 }
 0x11d   :  { %v221_v48 = vpop.permute.xlu1 %220  ;;  %v249_v49 = vpop.permute.xlu0 %248 }
 0x11e   :  { %v237_v50 = vmul.f32 %v417_v47, %v221_v48  ;;  %v266_v51 = vadd.f32 %v249_v49, %v236_v46 }
 0x120   :  { %v267_v53 = vadd.f32 %v251_v43, %v237_v50  ;;  %273 = vst.msk [vmem:[%s630_s6] sm:$0xff] %vm272_vm9, %v266_v51  ;;  %376 = vmatmul.msk.f32.vlgmr.msra.gmra.mxu1 %vm272_vm9, %v266_v51 }
 0x122   :  { %274 = vst.msk [vmem:[%s630_s6 + $0x8] sm:$0xff] %vm272_vm9, %v267_v53 }
 0x125   :  { %v227_v15 = vpop.permute.xlu1 %226 }
 0x126   :  { %v240_v54 = vmul.f32 %v419_v11, %v227_v15 }
 0x127   :  { %v223_v55 = vpop.permute.xlu0 %222 }
 0x128   :  { %v270_v56 = vadd.f32 %v257_v52, %v240_v54  ;;  %v238_v57 = vmul.f32 %v421_v21, %v223_v55  ;;  %377 = vmatmul.msk.f32.gmra.mxu1 %vm272_vm9, %v267_v53 }
 0x12a   :  { %277 = vst.msk [vmem:[%s630_s6 + $0x20] sm:$0xff] %vm272_vm9, %v270_v56  ;;  %v268_v25 = vadd.f32 %v253_v58, %v238_v57  ;;  %380 = vmatmul.msk.f32.vlgmr.msra.gmra.mxu3 %vm272_vm9, %v270_v56 }
 0x12c   :  { %275 = vst.msk [vmem:[%s630_s6 + $0x10] sm:$0xff] %vm272_vm9, %v268_v25 }
 0x12d   :  { %v229_v59 = vpop.permute.xlu1 %228 }
 0x12e   :  { %v241_v60 = vmul.f32 %v423_v32, %v229_v59 }
 0x12f   :  { %v259_v61 = vpop.permute.xlu0 %258 }
 0x130   :  { %v271_v62 = vadd.f32 %v259_v61, %v241_v60  ;;  %378 = vmatmul.msk.f32.gmra.mxu1 %vm272_vm9, %v268_v25 }
 0x132   :  { %278 = vst.msk [vmem:[%s630_s6 + $0x28] sm:$0xff] %vm272_vm9, %v271_v62  ;;  %381 = vmatmul.msk.f32.gmra.mxu3 %vm272_vm9, %v271_v62 }
 0x135   :  { %v225_v0 = vpop.permute.xlu1 %224 }
 0x136   :  { %v239_v1 = vmul.f32 %v425_v63, %v225_v0 }
 0x138   :  { %v269_v3 = vadd.f32 %v255_v2, %v239_v1 }
 0x13a   :  { %276 = vst.msk [vmem:[%s630_s6 + $0x18] sm:$0xff] %vm272_vm9, %v269_v3  ;;  %379 = vmatmul.msk.f32.gmra.mxu1 %vm272_vm9, %v269_v3 }
 0x19d   :  { %v319_v4 = vpop.f32.mrf.mxu1 }
 0x19e   :  { %v320_v6 = vadd.f32 %v389_v19, %v319_v4 }
 0x1a0   :  { %v343_v7 = vadd.f32 %v337_v5, %v320_v6 }
 0x1a2   :  { %350 = vst.msk [vmem:[%s632_s7] sm:$0xff] %vm349_vm10, %v343_v7 }
 0x1a5   :  { %v322_v8 = vpop.f32.mrf.mxu1 }
 0x1a6   :  { %v323_v10 = vadd.f32 %v389_v19, %v322_v8 }
 0x1a8   :  { %v344_v12 = vadd.f32 %v338_v9, %v323_v10 }
 0x1aa   :  { %351 = vst.msk [vmem:[%s632_s7 + $0x8] sm:$0xff] %vm349_vm10, %v344_v12 }
 0x1ad   :  { %v325_v13 = vpop.f32.mrf.mxu1  ;;  %v331_v16 = vpop.f32.mrf.mxu3 }
 0x1ae   :  { %v326_v18 = vadd.f32 %v389_v19, %v325_v13  ;;  %v332_v20 = vadd.f32 %v389_v19, %v331_v16 }
 0x1b0   :  { %v345_v22 = vadd.f32 %v339_v14, %v326_v18  ;;  %v347_v23 = vadd.f32 %v341_v17, %v332_v20 }
 0x1b2   :  { %352 = vst.msk [vmem:[%s632_s7 + $0x10] sm:$0xff] %vm349_vm10, %v345_v22 }
 0x1b3   :  { %354 = vst.msk [vmem:[%s632_s7 + $0x20] sm:$0xff] %vm349_vm10, %v347_v23 }
 0x1b5   :  { %v334_v24 = vpop.f32.mrf.mxu3 }
 0x1b6   :  { %v335_v27 = vadd.f32 %v389_v19, %v334_v24 }
 0x1b7   :  { %v328_v28 = vpop.f32.mrf.mxu1 }
 0x1b8   :  { %v348_v30 = vadd.f32 %v342_v26, %v335_v27  ;;  %v329_v31 = vadd.f32 %v389_v19, %v328_v28 }
 0x1ba   :  { %355 = vst.msk [vmem:[%s632_s7 + $0x28] sm:$0xff] %vm349_vm10, %v348_v30  ;;  %v346_v33 = vadd.f32 %v340_v29, %v329_v31 }
 0x1bc   :  { %353 = vst.msk [vmem:[%s632_s7 + $0x18] sm:$0xff] %vm349_vm10, %v346_v33 }

// kernel: mls_classifier_forward.8
= control target key start
LH: loop header
LB: loop body
LE: loop exit
PB: predicated region body
PF: predicated region fallthrough
CT: control target
= control target key end

     0   :  { %s322_s9 = smov 0   ;;  %s355_s0 = inlined_call_operand.vmem [shape: f32[2,8,9], index: 0, kind: input, shape index: {}]   ;;  %s356_s1 = inlined_call_operand.vmem [shape: f32[9,5], index: 1, kind: input, shape index: {}]   ;;  %s357_s2 = inlined_call_operand.vmem [shape: f32[2,8,8], index: 2, kind: output, shape index: {}]  }
   0x1 LB: > { %s274_s10 = sadd.s32 4294967295, %s305_s9   ;;  %p278_p0 = scmp.ge.s32.totalorder %s305_s9, 1  ;;  %s305_s9 = sphi %s322_s9, %s12_s9  }
   0x2   : > { %p111_p1 = scmp.lt.s32.totalorder %s305_s9, 3 }
   0x4   : > { %p112_p2 = pnand %p278_p0, %p111_p1 }
   0x5   : > { %p131_p3 = scmp.lt.s32.totalorder (!%p112_p2), %s274_s10, 1 }
   0x6   : > { %115 = sbr.rel (%p112_p2) target bundleno = 537 (0x219), region = 28 }
   0xb   : > { %v141_v0 = vld [vmem:[%s356_s1 + $0x8] sm:$0x1]  ;;  %vm146_vm0 = vcmask 1040384   ;;  %v140_v1 = vld [vmem:[%s356_s1] sm:$0xff]  ;;  %s359_s10 = smov (!%p131_p3, %s274_s10), 1  ;;  %vm142_vm1 = vcmask 72704  }
   0xc   : > { %281 = vmatpush.msk.msra.mxu0 %vm146_vm0, %v141_v0  ;;  %s279_s15 = sshll.u32 %s359_s10, 3  ;;  %vm170_vm2 = vcmask 39936   ;;  %vm195_vm3 = vcmask 64512  }
   0xd   : > { %s134_s18 = scalar_lea.vmem %s355_s0, %s279_s15  ;;  %s138_s21 = scalar_lea.vmem %s357_s2, %s279_s15 }
   0xe   : > { %165 = vmatpush.msra.mxu0 %v140_v1  ;;  %v139_v2 = vld [vmem:[%s134_s18] sm:$0xff] }
   0xf   : > { %282 = vmatmul.msk.f32.vlgmr.msra.gmra.mxu0 %vm142_vm1, %v139_v2 }
  0x8c   : > { %v167_v3 = vpop.f32.mrf.mxu0 }
  0x8d   : > { %283 = vmatpush.xpose.msk.msra.mxu1 %vm170_vm2, %v167_v3 }
  0x90   : > { %284 = vmatmul.msk.f32.vlgmr.msra.gmra.mxu1 %vm170_vm2, %v167_v3 }
 0x10d   : > { %v191_v4 = vpop.f32.mrf.mxu1 }
 0x10e   : > { %v194_v5 = vmax.f32 %v191_v4, 0.0 }
 0x110   : > { %v196_v6 = vsel %vm195_vm3, %v194_v5, -inf }
 0x111   : > { %197 = vmax.xlane.f32.xlu0 %v196_v6 }
 0x184   : > { %v198_v7 = vpop.xlane.xlu0 %197 }
 0x185   : > { %v199_v8 = vsub.f32 %v194_v5, %v198_v7 }
 0x187   : > { %v200_v9 = vmul.f32 1.442695, %v199_v8 }
 0x189   : > { %295 = vpow2.f32 %v200_v9 }
 0x18f   : > { %v296_v10 = vpop.eup %295 }
 0x190   : > { %v202_v11 = vsel %vm195_vm3, %v296_v10, 0.0 }
 0x191   : > { %203 = vadd.xlane.f32.xlu0 %v202_v11 }
 0x204   : > { %v204_v12 = vpop.xlane.xlu0 %203 }
 0x205   : > { %297 = vrcp.f32 %v204_v12  ;;  %v216_v16 = vand.u32 2147483648, %v204_v12  ;;  %v214_v18 = vand.u32 2147483647, %v204_v12  ;;  %vm210_vm5 = vweird.f32 %v204_v12 }
 0x207   : > { %v217_v20 = vor.u32 1.1754944e-38, %v216_v16  ;;  %vm215_vm7 = vcmp.eq.f32.partialorder %v214_v18, 8.507059e+37 }
 0x20b   : > { %v298_v13 = vpop.eup %297 }
 0x20c   : > { %v206_v14 = vmul.f32 %v298_v13, %v204_v12  ;;  %vm211_vm4 = vweird.f32 %v298_v13 }
 0x20d   : > { %vm212_vm6 = vmor %vm210_vm5, %vm211_vm4 }
 0x20e   : > { %v207_v15 = vsub.f32 1.0, %v206_v14 }
 0x210   : > { %v208_v17 = vmul.f32 %v298_v13, %v207_v15 }
 0x212   : > { %v209_v19 = vadd.f32 %v298_v13, %v208_v17 }
 0x214   : > { %v213_v21 = vsel %vm212_vm6, %v298_v13, %v209_v19 }
 0x215   : > { %v218_v22 = vsel %vm215_vm7, %v217_v20, %v213_v21 }
 0x216   : > { %v219_v23 = vmul.f32 %v296_v10, %v218_v22 }
 0x218   : > { %220 = vst.msk [vmem:[%s138_s21] sm:$0xff] %vm195_vm3, %v219_v23 }
 0x219 PF: > { %s12_s9 = sadd.s32 1, %s305_s9  }
 0x21a   : > { %p9_p4 = scmp.ge.s32.totalorder %s12_s9, 4  }
 0x21c   :  { %11 = sbr.rel (!%p9_p4) target bundleno = 1 (0x1), region = 58 }

// kernel: mls_classifier_forward.12
= control target key start
LH: loop header
LB: loop body
LE: loop exit
PB: predicated region body
PF: predicated region fallthrough
CT: control target
= control target key end

     0   :  { %s388_s12 = smov 0   ;;  %s405_s0 = inlined_call_operand.vmem [shape: f32[2,8,8], index: 0, kind: input, shape index: {}]   ;;  %s406_s1 = inlined_call_operand.vmem [shape: f32[2,8,8], index: 1, kind: input, shape index: {}]   ;;  %s407_s2 = inlined_call_operand.vmem [shape: f32[2,8,8], index: 2, kind: output, shape index: {0}]   ;;  %s408_s3 = inlined_call_operand.vmem [shape: f32[2,8,8], index: 3, kind: output, shape index: {1}]  }
   0x1 LB: > { %s339_s13 = sadd.s32 4294967295, %s366_s12   ;;  %p343_p0 = scmp.ge.s32.totalorder %s366_s12, 1  ;;  %s366_s12 = sphi %s388_s12, %s14_s12  }
   0x2   : > { %p148_p1 = scmp.lt.s32.totalorder %s366_s12, 3 }
   0x4   : > { %p149_p2 = pnand %p343_p0, %p148_p1 }
   0x5   : > { %p178_p3 = scmp.lt.s32.totalorder (!%p149_p2), %s339_s13, 1 }
   0x6   : > { %152 = sbr.rel (%p149_p2) target bundleno = 272 (0x110), region = 28 }
   0xb   : > { %s410_s13 = smov (!%p178_p3, %s339_s13), 1  ;;  %vm196_vm0 = vcmask 64512  }
   0xc   : > { %s344_s14 = sshll.u32 %s410_s13, 3 }
   0xd   : > { %s185_s17 = scalar_lea.vmem %s406_s1, %s344_s14  ;;  %s181_s20 = scalar_lea.vmem %s405_s0, %s344_s14 }
   0xe   : > { %v195_v0 = vld [vmem:[%s185_s17] sm:$0xff]  ;;  %s189_s23 = scalar_lea.vmem %s407_s2, %s344_s14  ;;  %s193_s26 = scalar_lea.vmem %s408_s3, %s344_s14 }
   0xf   : > { %v194_v1 = vld [vmem:[%s181_s20] sm:$0xff]  ;;  %215 = vmatpush.msra.mxu0 %v195_v0 }
  0x10   : > { %348 = vmatmul.msk.f32.vlgmr.msra.gmra.mxu0 %vm196_vm0, %v194_v1 }
  0x8d   : > { %v217_v2 = vpop.f32.mrf.mxu0 }
  0x8e   : > { %220 = vst.msk [vmem:[%s189_s23] sm:$0xff] %vm196_vm0, %v217_v2  ;;  %236 = vmatpush.msra.mxu1 %v217_v2 }
  0x8f   : > { %349 = vmatmul.msk.f32.vlgmr.msra.gmra.mxu1 %vm196_vm0, %v194_v1 }
 0x10c   : > { %v238_v3 = vpop.f32.mrf.mxu1 }
 0x10d   : > { %v241_v4 = vmax.f32 %v238_v3, 0.0 }
 0x10f   : > { %242 = vst.msk [vmem:[%s193_s26] sm:$0xff] %vm196_vm0, %v241_v4 }
 0x110 PF: > { %s14_s12 = sadd.s32 1, %s366_s12  }
 0x111   : > { %p11_p4 = scmp.ge.s32.totalorder %s14_s12, 4  }
 0x113   :  { %13 = sbr.rel (!%p11_p4) target bundleno = 1 (0x1), region = 73 }

// kernel: mls_classifier_forward.13
= control target key start
LH: loop header
LB: loop body
LE: loop exit
PB: predicated region body
PF: predicated region fallthrough
CT: control target
= control target key end

     0   :  { %vm34_vm0 = vcmask 64512   ;;  %vm143_vm1 = vcmask 818176   ;;  %s259_s5 = inlined_call_operand.vmem [shape: f32[8,108], index: 5, kind: input, shape index: {}]   ;;  %s260_s2 = inlined_call_operand.vmem [shape: f32[16,8], index: 2, kind: input, shape index: {}]   ;;  %s261_s4 = inlined_call_operand.vmem [shape: f32[8,108], index: 4, kind: input, shape index: {}]   ;;  %s262_s3 = inlined_call_operand.vmem [shape: f32[8,108], index: 3, kind: input, shape index: {}]   ;;  %s263_s1 = inlined_call_operand.vmem [shape: f32[16,8], index: 1, kind: input, shape index: {}]   ;;  %s264_s0 = inlined_call_operand.vmem [shape: f32[16,8], index: 0, kind: input, shape index: {}]   ;;  %s265_s6 = inlined_call_operand.vmem [shape: f32[1,108], index: 6, kind: input, shape index: {}]   ;;  %s266_s7 = inlined_call_operand.vmem [shape: f32[16,8], index: 7, kind: output, shape index: {0}]   ;;  %s267_s8 = inlined_call_operand.vmem [shape: f32[16,100], index: 8, kind: output, shape index: {1}]  }
   0x1   :  { %v95_v0 = vld [vmem:[%s259_s5] sm:$0xff]  ;;  %v32_v6 = vld [vmem:[%s263_s1 + $0x8] sm:$0xff] }
   0x2   :  { %v93_v1 = vld [vmem:[%s260_s2] sm:$0xff]  ;;  %117 = vmatpush.msra.mxu2 %v95_v0  ;;  %v94_v7 = vld [vmem:[%s260_s2 + $0x8] sm:$0xff]  ;;  %s163_s2 = smov 120  }
   0x3   :  { %v33_v2 = vld [vmem:[%s261_s4] sm:$0xff]  ;;  %158 = vmatmul.msk.f32.vlgmr.msra.gmra.mxu2 %vm34_vm0, %v93_v1  ;;  %v29_v8 = vld [vmem:[%s264_s0 + $0x8] sm:$0xff] }
   0x4   :  { %56 = vmatpush.msra.mxu0 %v33_v2  ;;  %v30_v3 = vld [vmem:[%s262_s3] sm:$0xff]  ;;  %160 = vmatpush.msra.mxu3 %v33_v2 }
   0x5   :  { %v31_v4 = vld [vmem:[%s263_s1] sm:$0xff]  ;;  %85 = vmatpush.msra.mxu1 %v30_v3  ;;  %155 = vmatmul.msk.f32.vlgmr.msra.gmra.mxu3 %vm34_vm0, %v32_v6 }
   0x6   :  { %v28_v5 = vld [vmem:[%s264_s0] sm:$0xff]  ;;  %154 = vmatmul.msk.f32.vlgmr.msra.gmra.mxu0 %vm34_vm0, %v31_v4 }
   0x7   :  { %156 = vmatmul.msk.f32.vlgmr.msra.gmra.mxu1 %vm34_vm0, %v28_v5  ;;  %v162_v12 = vld [vmem:[%s265_s6] ss:$0 sm:$0xff] }
   0xb   :  { %159 = vmatmul.msk.f32.gmra.mxu2 %vm34_vm0, %v94_v7 }
   0xf   :  { %157 = vmatmul.msk.f32.gmra.mxu1 %vm34_vm0, %v29_v8 }
  0x83   :  { %v58_v9 = vpop.f32.mrf.mxu0 }
  0x84   :  { %v87_v10 = vpop.f32.mrf.mxu1 }
  0x85   :  { %v88_v11 = vadd.f32 %v87_v10, %v58_v9 }
  0x86   :  { %v119_v13 = vpop.f32.mrf.mxu2 }
  0x87   :  { %v125_v14 = vadd.f32 %v119_v13, %v88_v11 }
  0x88   :  { %v61_v16 = vpop.f32.mrf.mxu3 }
  0x89   :  { %v131_v15 = vadd.f32 %v162_v12, %v125_v14 }
  0x8b   :  { %137 = vrot.lane.b32.xlu0 %v131_v15, %s163_s2  ;;  %133 = vst.msk [vmem:[%s266_s7] sm:$0xff] %vm34_vm0, %v131_v15 }
  0x8c   :  { %v90_v17 = vpop.f32.mrf.mxu1 }
  0x8d   :  { %v91_v18 = vadd.f32 %v90_v17, %v61_v16 }
  0x8e   :  { %v122_v19 = vpop.f32.mrf.mxu2 }
  0x8f   :  { %v126_v20 = vadd.f32 %v122_v19, %v91_v18 }
  0x91   :  { %v132_v21 = vadd.f32 %v162_v12, %v126_v20 }
  0x93   :  { %134 = vst.msk [vmem:[%s266_s7 + $0x8] sm:$0xff] %vm34_vm0, %v132_v21  ;;  %139 = vrot.lane.b32.xlu0 %v132_v21, %s163_s2 }
  0xfd   :  { %v138_v22 = vpop.permute.xlu0 %137 }
  0xfe   :  { %144 = vst.msk [vmem:[%s267_s8] sm:$0xff] %vm143_vm1, %v138_v22 }
 0x105   :  { %v140_v23 = vpop.permute.xlu0 %139 }
 0x106   :  { %145 = vst.msk [vmem:[%s267_s8 + $0x8] sm:$0xff] %vm143_vm1, %v140_v23 }

// kernel: mls_classifier_forward.15
= control target key start
LH: loop header
LB: loop body
LE: loop exit
PB: predicated region body
PF: predicated region fallthrough
CT: control target
= control target key end

     0   :  { %vm29_vm0 = vcmask 64512   ;;  %s199_s0 = inlined_call_operand.vmem [shape: f32[16,8], index: 0, kind: input, shape index: {}]   ;;  %s200_s1 = inlined_call_operand.vmem [shape: f32[16,8], index: 1, kind: input, shape index: {}]   ;;  %s201_s2 = inlined_call_operand.vmem [shape: f32[8,16], index: 2, kind: input, shape index: {}]   ;;  %s202_s3 = inlined_call_operand.vmem [shape: f32[1,16], index: 3, kind: input, shape index: {}]   ;;  %s203_s4 = inlined_call_operand.vmem [shape: f32[16,16], index: 4, kind: input, shape index: {}]   ;;  %s204_s5 = inlined_call_operand.hbm [shape: f32[16,8], index: 5, kind: output, shape index: {0}]   ;;  %s205_s6 = inlined_call_operand.vmem [shape: f32[16,16], index: 6, kind: output, shape index: {1}]  }
   0x1   :  { %v32_v0 = vld [vmem:[%s201_s2] sm:$0xff]  ;;  %v24_v4 = vld [vmem:[%s199_s0 + $0x8] sm:$0xff] }
   0x2   :  { %v23_v1 = vld [vmem:[%s199_s0] sm:$0xff]  ;;  %58 = vmatpush.msra.mxu0 %v32_v0  ;;  %97 = vmatpush.msra.mxu1 %v32_v0  ;;  %v26_v5 = vld [vmem:[%s200_s1 + $0x8] sm:$0xff] }
   0x3   :  { %v25_v2 = vld [vmem:[%s200_s1] sm:$0xff]  ;;  %v28_v6 = vadd.f32 %v26_v5, %v24_v4 }
   0x4   :  { %v27_v3 = vadd.f32 %v25_v2, %v23_v1 }
   0x5   :  { %12 = vsyncpa [#allocation3], 0  ;;  %31 = vst.msk [vmem:[#allocation2 + $0x8] sm:$0xff] %vm29_vm0, %v28_v6  ;;  %96 = vmatmul.msk.f32.vlgmr.msra.gmra.mxu1 %vm29_vm0, %v28_v6  ;;  %s128_s2 = smov [#allocation2]   ;;  %s79_s10 = sshll.u32 %s204_s5, 4  ;;  %v66_v9 = vld [vmem:[%s203_s4] sm:$0xff]  ;;  %s80_s10 = int_to_ptr.hbm [resolvable:$true] %s79_s10 }
   0x6   :  { %30 = vst.msk [vmem:[#allocation2] sm:$0xff] %vm29_vm0, %v27_v3  ;;  %95 = vmatmul.msk.f32.vlgmr.msra.gmra.mxu0 %vm29_vm0, %v27_v3  ;;  %s77_s7 = sshll.u32 %s128_s2, 4  ;;  %s129_s11 = smov 128   ;;  %v101_v7 = vld [vmem:[%s202_s3] ss:$0 sm:$0xff]  ;;  %v67_v12 = vld [vmem:[%s203_s4 + $0x8] sm:$0xff]  ;;  %s78_s7 = int_to_ptr.vmem [resolvable:$true] %s77_s7 }
   0x7   :  { %s130_s0 = smov 8   ;;  %vm70_vm1 = vcmask 130048  }
   0x8   :  { %85 = dma.vmem_to_hbm [thread:$0]  %s78_s7, 256, %s80_s10, [#allocation3], %s129_s11, %s129_s11, %s130_s0  }
  0x82   :  { %v63_v11 = vpop.f32.mrf.mxu1 }
  0x83   :  { %v60_v8 = vpop.f32.mrf.mxu0  ;;  %v64_v13 = vadd.f32 %v101_v7, %v63_v11 }
  0x84   :  { %v61_v10 = vadd.f32 %v101_v7, %v60_v8 }
  0x85   :  { %v69_v15 = vadd.f32 %v67_v12, %v64_v13 }
  0x86   :  { %v68_v14 = vadd.f32 %v66_v9, %v61_v10 }
  0x87   :  { %72 = vst.msk [vmem:[%s205_s6 + $0x8] sm:$0xff] %vm70_vm1, %v69_v15 }
  0x88   :  { %71 = vst.msk [vmem:[%s205_s6] sm:$0xff] %vm70_vm1, %v68_v14 }
  0x89   :  { %126 = dma.done.wait [#allocation3], 256  }
  0x8a   :  { %127 = vsyncadd [#allocation3], 4294967040 }
  0x8b   :  { %94 = vsyncpa [#allocation3], 1 }

// kernel: mls_classifier_forward.14
= control target key start
LH: loop header
LB: loop body
LE: loop exit
PB: predicated region body
PF: predicated region fallthrough
CT: control target
= control target key end

     0   :  { %s965_s9 = smov 0   ;;  %s1303_s0 = inlined_call_operand.vmem [shape: f32[2,8,1,8], index: 0, kind: input, shape index: {}]   ;;  %s1304_s1 = inlined_call_operand.vmem [shape: f32[2,8,1,100], index: 1, kind: input, shape index: {}]   ;;  %s1305_s2 = inlined_call_operand.vmem [shape: f32[2,1,8,8], index: 2, kind: output, shape index: {}]  }
   0x1 LB: > { %s856_s10 = sadd.s32 4294967295, %s948_s9   ;;  %p860_p0 = scmp.ge.s32.totalorder %s948_s9, 1  ;;  %s948_s9 = sphi %s965_s9, %s12_s9  }
   0x2   : > { %p120_p1 = scmp.lt.s32.totalorder %s948_s9, 3 }
   0x4   : > { %p121_p2 = pnand %p860_p0, %p120_p1 }
   0x5   : > { %p144_p3 = scmp.lt.s32.totalorder (!%p121_p2), %s856_s10, 1 }
   0x6   : > { %124 = sbr.rel (%p121_p2) target bundleno = 611 (0x263), region = 28 }
   0xb   : > { %s1338_s10 = smov (!%p144_p3, %s856_s10), 1  ;;  %vm1306_vm0 = vcmask 818176  }
   0xc   : > { %s973_s11 = sshll.u32 %s1338_s10, 3 }
   0xd   : > { %s151_s14 = scalar_lea.vmem %s1304_s1, %s973_s11  ;;  %s147_s17 = scalar_lea.vmem %s1303_s0, %s973_s11 }
   0xe   : > { %v164_v0 = vld [vmem:[%s151_s14] sm:$0x1]  ;;  %v165_v1 = vld [vmem:[%s151_s14 + $0x1] sm:$0x1]  ;;  %v166_v2 = vld [vmem:[%s151_s14 + $0x2] sm:$0x1]  ;;  %s155_s20 = scalar_lea.vmem %s1305_s2, %s973_s11 }
   0xf   : > { %v167_v3 = vld [vmem:[%s151_s14 + $0x3] sm:$0x1]  ;;  %180 = vst [vmem:[#allocation1] ss:$9 sm:$0xff] %v164_v0  ;;  %v168_v4 = vld [vmem:[%s151_s14 + $0x4] sm:$0x1] }
  0x10   : > { %182 = vst [vmem:[#allocation1 + $0x1] ss:$9 sm:$0xff] %v165_v1  ;;  %v169_v5 = vld [vmem:[%s151_s14 + $0x5] sm:$0x1]  ;;  %v170_v6 = vld [vmem:[%s151_s14 + $0x6] sm:$0x1] }
  0x11   : > { %184 = vst [vmem:[#allocation1 + $0x2] ss:$9 sm:$0xff] %v166_v2  ;;  %v171_v7 = vld [vmem:[%s151_s14 + $0x7] sm:$0x1]  ;;  %v156_v43 = vld [vmem:[%s147_s17] sm:$0x1] }
  0x12   : > { %186 = vst [vmem:[#allocation1 + $0x3] ss:$9 sm:$0xff] %v167_v3  ;;  %v157_v44 = vld [vmem:[%s147_s17 + $0x1] sm:$0x1]  ;;  %v158_v45 = vld [vmem:[%s147_s17 + $0x2] sm:$0x1] }
  0x13   : > { %188 = vst [vmem:[#allocation1 + $0x4] ss:$9 sm:$0xff] %v168_v4  ;;  %v159_v47 = vld [vmem:[%s147_s17 + $0x3] sm:$0x1]  ;;  %v160_v49 = vld [vmem:[%s147_s17 + $0x4] sm:$0x1] }
  0x14   : > { %190 = vst [vmem:[#allocation1 + $0x5] ss:$9 sm:$0xff] %v169_v5  ;;  %v161_v50 = vld [vmem:[%s147_s17 + $0x5] sm:$0x1]  ;;  %v162_v51 = vld [vmem:[%s147_s17 + $0x6] sm:$0x1] }
  0x15   : > { %192 = vst [vmem:[#allocation1 + $0x6] ss:$9 sm:$0xff] %v170_v6  ;;  %v163_v52 = vld [vmem:[%s147_s17 + $0x7] sm:$0x1] }
  0x16   : > { %194 = vst [vmem:[#allocation1 + $0x7] ss:$9 sm:$0xff] %v171_v7 }
  0x1d   : > { %v195_v8 = vld [vmem:[#allocation1] sm:$0xff] }
  0x1e   : > { %v198_v9 = vsel %vm1306_vm0, %v195_v8, -inf }
  0x1f   : > { %199 = vmax.xlane.f32.xlu0 %v198_v9 }
  0x92   : > { %v200_v10 = vpop.xlane.xlu0 %199 }
  0x93   : > { %v202_v11 = vperm.slane %v200_v10, 0  ;;  %v203_v12 = vperm.slane %v200_v10, 1  ;;  %v204_v13 = vperm.slane %v200_v10, 2  ;;  %v205_v14 = vperm.slane %v200_v10, 3 }
  0x94   : > { %v206_v15 = vperm.slane %v200_v10, 4  ;;  %v207_v16 = vperm.slane %v200_v10, 5  ;;  %v208_v17 = vperm.slane %v200_v10, 6  ;;  %v209_v18 = vperm.slane %v200_v10, 7 }
  0x95   : > { %v218_v19 = vsub.f32 %v164_v0, %v202_v11  ;;  %v219_v20 = vsub.f32 %v165_v1, %v203_v12  ;;  %v220_v21 = vsub.f32 %v166_v2, %v204_v13  ;;  %v221_v22 = vsub.f32 %v167_v3, %v205_v14 }
  0x96   : > { %v222_v23 = vsub.f32 %v168_v4, %v206_v15  ;;  %v223_v24 = vsub.f32 %v169_v5, %v207_v16  ;;  %v224_v25 = vsub.f32 %v170_v6, %v208_v17  ;;  %v225_v29 = vsub.f32 %v171_v7, %v209_v18 }
  0x97   : > { %v226_v26 = vmul.f32 1.442695, %v218_v19  ;;  %v228_v27 = vmul.f32 1.442695, %v219_v20  ;;  %v230_v28 = vmul.f32 1.442695, %v220_v21 }
  0x98   : > { %v232_v30 = vmul.f32 1.442695, %v221_v22  ;;  %v234_v31 = vmul.f32 1.442695, %v222_v23  ;;  %v236_v32 = vmul.f32 1.442695, %v223_v24 }
  0x99   : > { %878 = vpow2.f32 %v226_v26  ;;  %v238_v33 = vmul.f32 1.442695, %v224_v25  ;;  %v240_v34 = vmul.f32 1.442695, %v225_v29 }
  0x9a   : > { %880 = vpow2.f32 %v228_v27 }
  0x9b   : > { %882 = vpow2.f32 %v230_v28 }
  0x9c   : > { %884 = vpow2.f32 %v232_v30 }
  0x9d   : > { %886 = vpow2.f32 %v234_v31 }
  0x9e   : > { %888 = vpow2.f32 %v236_v32 }
  0x9f   : > { %v980_v35 = vpop.eup %878  ;;  %890 = vpow2.f32 %v238_v33 }
  0xa0   : > { %v982_v36 = vpop.eup %880  ;;  %892 = vpow2.f32 %v240_v34  ;;  %250 = vst [vmem:[#allocation1] ss:$9 sm:$0xff] %v980_v35 }
  0xa1   : > { %v985_v37 = vpop.eup %882  ;;  %252 = vst [vmem:[#allocation1 + $0x1] ss:$9 sm:$0xff] %v982_v36 }
  0xa2   : > { %v988_v38 = vpop.eup %884  ;;  %254 = vst [vmem:[#allocation1 + $0x2] ss:$9 sm:$0xff] %v985_v37 }
  0xa3   : > { %v991_v39 = vpop.eup %886  ;;  %256 = vst [vmem:[#allocation1 + $0x3] ss:$9 sm:$0xff] %v988_v38 }
  0xa4   : > { %v994_v40 = vpop.eup %888  ;;  %258 = vst [vmem:[#allocation1 + $0x4] ss:$9 sm:$0xff] %v991_v39 }
  0xa5   : > { %v997_v41 = vpop.eup %890  ;;  %260 = vst [vmem:[#allocation1 + $0x5] ss:$9 sm:$0xff] %v994_v40 }
  0xa6   : > { %v1000_v42 = vpop.eup %892  ;;  %262 = vst [vmem:[#allocation1 + $0x6] ss:$9 sm:$0xff] %v997_v41 }
  0xa7   : > { %264 = vst [vmem:[#allocation1 + $0x7] ss:$9 sm:$0xff] %v1000_v42 }
  0xae   : > { %v265_v46 = vld [vmem:[#allocation1] sm:$0xff] }
  0xaf   : > { %415 = vst [vmem:[#allocation1] ss:$9 sm:$0xff] %v156_v43  ;;  %v267_v48 = vsel %vm1306_vm0, %v265_v46, 0.0 }
  0xb0   : > { %417 = vst [vmem:[#allocation1 + $0x1] ss:$9 sm:$0xff] %v157_v44  ;;  %268 = vadd.xlane.f32.xlu0 %v267_v48 }
  0xb1   : > { %419 = vst [vmem:[#allocation1 + $0x2] ss:$9 sm:$0xff] %v158_v45 }
  0xb2   : > { %421 = vst [vmem:[#allocation1 + $0x3] ss:$9 sm:$0xff] %v159_v47 }
  0xb3   : > { %423 = vst [vmem:[#allocation1 + $0x4] ss:$9 sm:$0xff] %v160_v49 }
  0xb4   : > { %425 = vst [vmem:[#allocation1 + $0x5] ss:$9 sm:$0xff] %v161_v50 }
  0xb5   : > { %427 = vst [vmem:[#allocation1 + $0x6] ss:$9 sm:$0xff] %v162_v51 }
  0xb6   : > { %429 = vst [vmem:[#allocation1 + $0x7] ss:$9 sm:$0xff] %v163_v52 }
  0xbd   : > { %v430_v53 = vld [vmem:[#allocation1] sm:$0xff] }
  0xbe   : > { %432 = vxpose.xlu1.b32.start.end [1/1] (short) (narrow) %v430_v53, 8 }
 0x123   : > { %v269_v54 = vpop.xlane.xlu0 %268 }
 0x124   : > { %v1009_v55 = vperm.slane %v269_v54, 0  ;;  %v1011_v56 = vperm.slane %v269_v54, 1  ;;  %v1013_v57 = vperm.slane %v269_v54, 2  ;;  %v1015_v58 = vperm.slane %v269_v54, 3 }
 0x125   : > { %v1018_v59 = vperm.slane %v269_v54, 4  ;;  %v1023_v61 = vperm.slane %v269_v54, 5  ;;  %v1030_v2 = vperm.slane %v269_v54, 6  ;;  %v1035_v6 = vperm.slane %v269_v54, 7 }
 0x126   : > { %894 = vrcp.f32 %v1009_v55  ;;  %v298_v60 = vand.u32 2147483648, %v1009_v55  ;;  %v296_v62 = vand.u32 2147483647, %v1009_v55  ;;  %v311_v63 = vand.u32 2147483647, %v1011_v56 }
 0x127   : > { %896 = vrcp.f32 %v1011_v56  ;;  %v313_v0 = vand.u32 2147483648, %v1011_v56  ;;  %v328_v1 = vand.u32 2147483648, %v1013_v57  ;;  %v326_v3 = vand.u32 2147483647, %v1013_v57 }
 0x128   : > { %898 = vrcp.f32 %v1013_v57  ;;  %v343_v4 = vand.u32 2147483648, %v1015_v58  ;;  %vm292_vm1 = vweird.f32 %v1009_v55  ;;  %v299_v7 = vor.u32 1.1754944e-38, %v298_v60 }
 0x129   : > { %900 = vrcp.f32 %v1015_v58  ;;  %vm307_vm2 = vweird.f32 %v1011_v56  ;;  %vm1040_vm3 = vcmp.eq.f32.partialorder %v296_v62, 8.507059e+37  ;;  %vm322_vm4 = vweird.f32 %v1013_v57 }
 0x12a   : > { %902 = vrcp.f32 %v1018_v59  ;;  %v341_v11 = vand.u32 2147483647, %v1015_v58  ;;  %vm1048_vm5 = vcmp.eq.f32.partialorder %v311_v63, 8.507059e+37  ;;  %v314_v15 = vor.u32 1.1754944e-38, %v313_v0 }
 0x12b   : > { %904 = vrcp.f32 %v1023_v61  ;;  %v329_v16 = vor.u32 1.1754944e-38, %v328_v1  ;;  %v356_v17 = vand.u32 2147483647, %v1018_v59  ;;  %vm1054_vm6 = vcmp.eq.f32.partialorder %v326_v3, 8.507059e+37 }
 0x12c   : > { %v895_v5 = vpop.eup %894  ;;  %v344_v21 = vor.u32 1.1754944e-38, %v343_v4  ;;  %v358_v22 = vand.u32 2147483648, %v1018_v59  ;;  %906 = vrcp.f32 %v1030_v2  ;;  %vm1063_vm12 = vcmp.eq.f32.partialorder %v341_v11, 8.507059e+37 }
 0x12d   : > { %v897_v8 = vpop.eup %896  ;;  %v288_v9 = vmul.f32 %v895_v5, %v1009_v55  ;;  %vm293_vm8 = vweird.f32 %v895_v5  ;;  %vm1068_vm13 = vcmp.eq.f32.partialorder %v356_v17, 8.507059e+37  ;;  %v371_v33 = vand.u32 2147483647, %v1023_v61 }
 0x12e   : > { %v899_v12 = vpop.eup %898  ;;  %v303_v13 = vmul.f32 %v897_v8, %v1011_v56  ;;  %vm308_vm9 = vweird.f32 %v897_v8  ;;  %v373_v34 = vand.u32 2147483648, %v1023_v61  ;;  %vm294_vm0 = vmor %vm292_vm1, %vm293_vm8  ;;  %908 = vrcp.f32 %v1035_v6 }
 0x12f   : > { %v289_v18 = vsub.f32 1.0, %v288_v9  ;;  %v318_v19 = vmul.f32 %v899_v12, %v1013_v57  ;;  %v901_v23 = vpop.eup %900  ;;  %vm323_vm11 = vweird.f32 %v899_v12  ;;  %vm309_vm14 = vmor %vm307_vm2, %vm308_vm9  ;;  %v386_v17 = vand.u32 2147483647, %v1030_v2 }
 0x130   : > { %v304_v24 = vsub.f32 1.0, %v303_v13  ;;  %v903_v25 = vpop.eup %902  ;;  %v333_v28 = vmul.f32 %v901_v23, %v1015_v58  ;;  %vm338_vm15 = vweird.f32 %v901_v23  ;;  %vm324_vm1 = vmor %vm322_vm4, %vm323_vm11  ;;  %v374_v11 = vor.u32 1.1754944e-38, %v373_v34 }
 0x131   : > { %v290_v26 = vmul.f32 %v895_v5, %v289_v18  ;;  %v319_v27 = vsub.f32 1.0, %v318_v19  ;;  %v348_v31 = vmul.f32 %v903_v25, %v1018_v59  ;;  %v905_v43 = vpop.eup %904  ;;  %vm353_vm10 = vweird.f32 %v903_v25 }
 0x132   : > { %v305_v30 = vmul.f32 %v897_v8, %v304_v24  ;;  %v334_v46 = vsub.f32 1.0, %v333_v28  ;;  %v363_v49 = vmul.f32 %v905_v43, %v1023_v61  ;;  %vm368_vm7 = vweird.f32 %v905_v43  ;;  %v907_v53 = vpop.eup %906 }
 0x133   : > { %v291_v44 = vadd.f32 %v895_v5, %v290_v26  ;;  %v320_v45 = vmul.f32 %v899_v12, %v319_v27  ;;  %v349_v48 = vsub.f32 1.0, %v348_v31  ;;  %vm383_vm9 = vweird.f32 %v907_v53 }
 0x134   : > { %v306_v47 = vadd.f32 %v897_v8, %v305_v30  ;;  %v335_v52 = vmul.f32 %v901_v23, %v334_v46  ;;  %v364_v62 = vsub.f32 1.0, %v363_v49  ;;  %v513_v19 = vlaneseq }
 0x135   : > { %v295_v50 = vsel %vm294_vm0, %v895_v5, %v291_v44  ;;  %v321_v51 = vadd.f32 %v899_v12, %v320_v45  ;;  %v350_v55 = vmul.f32 %v903_v25, %v349_v48  ;;  %vm1318_vm0 = vweird.f32 %v1015_v58 }
 0x136   : > { %v300_v54 = vsel %vm1040_vm3, %v299_v7, %v295_v50  ;;  %v310_v60 = vsel %vm309_vm14, %v897_v8, %v306_v47  ;;  %v336_v1 = vadd.f32 %v901_v23, %v335_v52  ;;  %vm339_vm2 = vmor %vm1318_vm0, %vm338_vm15  ;;  %v365_v5 = vmul.f32 %v905_v43, %v364_v62 }
 0x137   : > { %v1088_v63 = vmul.f32 %v980_v35, %v300_v54  ;;  %v315_v56 = vsel %vm1048_vm5, %v314_v15, %v310_v60  ;;  %v325_v0 = vsel %vm324_vm1, %v899_v12, %v321_v51  ;;  %v351_v57 = vadd.f32 %v903_v25, %v350_v55 }
 0x138   : > { %v1093_v3 = vmul.f32 %v982_v36, %v315_v56  ;;  %v330_v4 = vsel %vm1054_vm6, %v329_v16, %v325_v0  ;;  %v340_v7 = vsel %vm339_vm2, %v901_v23, %v336_v1  ;;  %vm1319_vm3 = vweird.f32 %v1018_v59 }
 0x139   : > { %v1101_v35 = vmul.f32 %v985_v37, %v330_v4  ;;  %vm354_vm4 = vmor %vm1319_vm3, %vm353_vm10  ;;  %v359_v8 = vor.u32 1.1754944e-38, %v358_v22  ;;  %v378_v36 = vmul.f32 %v907_v53, %v1030_v2  ;;  %472 = vst [vmem:[#allocation1] ss:$9 sm:$0xff] %v1088_v63  ;;  %v345_v9 = vsel %vm1063_vm12, %v344_v21, %v340_v7  ;;  %v909_v21 = vpop.eup %908 }
 0x13a   : > { %v355_v58 = vsel %vm354_vm4, %v903_v25, %v351_v57  ;;  %v366_v10 = vadd.f32 %v905_v43, %v365_v5  ;;  %vm372_vm5 = vcmp.eq.f32.partialorder %v371_v33, 8.507059e+37  ;;  %474 = vst [vmem:[#allocation1 + $0x1] ss:$9 sm:$0xff] %v1093_v3  ;;  %v1112_v37 = vmul.f32 %v988_v38, %v345_v9 }
 0x13b   : > { %v360_v59 = vsel %vm1068_vm13, %v359_v8, %v355_v58  ;;  %vm1320_vm6 = vweird.f32 %v1023_v61  ;;  %v379_v12 = vsub.f32 1.0, %v378_v36  ;;  %476 = vst [vmem:[#allocation1 + $0x2] ss:$9 sm:$0xff] %v1101_v35  ;;  %v388_v15 = vand.u32 2147483648, %v1030_v2 }
 0x13c   : > { %vm369_vm8 = vmor %vm1320_vm6, %vm368_vm7  ;;  %v1121_v13 = vmul.f32 %v991_v39, %v360_v59  ;;  %478 = vst [vmem:[#allocation1 + $0x3] ss:$9 sm:$0xff] %v1112_v37  ;;  %vm382_vm7 = vweird.f32 %v1030_v2  ;;  %vm387_vm11 = vcmp.eq.f32.partialorder %v386_v17, 8.507059e+37  ;;  %v393_v24 = vmul.f32 %v909_v21, %v1035_v6 }
 0x13d   : > { %v370_v14 = vsel %vm369_vm8, %v905_v43, %v366_v10  ;;  %v380_v16 = vmul.f32 %v907_v53, %v379_v12  ;;  %vm384_vm10 = vmor %vm382_vm7, %vm383_vm9  ;;  %v389_v39 = vor.u32 1.1754944e-38, %v388_v15  ;;  %vm1132_vm12 = vcmp.lt.s32.totalorder %v513_v19, 100 }
 0x13e   : > { %v375_v38 = vsel %vm372_vm5, %v374_v11, %v370_v14  ;;  %480 = vst [vmem:[#allocation1 + $0x4] ss:$9 sm:$0xff] %v1121_v13  ;;  %v403_v2 = vand.u32 2147483648, %v1035_v6  ;;  %vm398_vm13 = vweird.f32 %v909_v21  ;;  %v401_v27 = vand.u32 2147483647, %v1035_v6 }
 0x13f   : > { %v376_v61 = vmul.f32 %v994_v40, %v375_v38  ;;  %v381_v18 = vadd.f32 %v907_v53, %v380_v16  ;;  %v394_v40 = vsub.f32 1.0, %v393_v24  ;;  %vm397_vm14 = vweird.f32 %v1035_v6 }
 0x140   : > { %v518_v29 = vsel %vm1132_vm12, %v1093_v3, -inf  ;;  %v521_v30 = vsel %vm1132_vm12, %v1121_v13, -inf  ;;  %vm399_vm15 = vmor %vm397_vm14, %vm398_vm13  ;;  %v404_v32 = vor.u32 1.1754944e-38, %v403_v2  ;;  %vm402_vm1 = vcmp.eq.f32.partialorder %v401_v27, 8.507059e+37 }
 0x141   : > { %482 = vst [vmem:[#allocation1 + $0x5] ss:$9 sm:$0xff] %v376_v61  ;;  %v385_v20 = vsel %vm384_vm10, %v907_v53, %v381_v18  ;;  %v395_v26 = vmul.f32 %v909_v21, %v394_v40  ;;  %v523_v31 = vsel %vm1132_vm12, %v376_v61, -inf  ;;  %v519_v6 = vsel %vm1132_vm12, %v1101_v35, -inf }
 0x142   : > { %v390_v22 = vsel %vm387_vm11, %v389_v39, %v385_v20  ;;  %v524_v45 = vmax.f32 %v518_v29, %v523_v31  ;;  %v520_v47 = vsel %vm1132_vm12, %v1112_v37, -inf  ;;  %vm1307_vm0 = vcmask 64512  }
 0x143   : > { %v391_v23 = vmul.f32 %v997_v41, %v390_v22  ;;  %v517_v41 = vsel %vm1132_vm12, %v1088_v63, -inf  ;;  %v396_v28 = vadd.f32 %v909_v21, %v395_v26  ;;  %vm1323_vm2 = vcmask 818176  }
 0x144   : > { %v522_v44 = vmax.f32 %v517_v41, %v521_v30 }
 0x145   : > { %484 = vst [vmem:[#allocation1 + $0x6] ss:$9 sm:$0xff] %v391_v23  ;;  %v400_v33 = vsel %vm399_vm15, %v909_v21, %v396_v28  ;;  %v525_v34 = vsel %vm1132_vm12, %v391_v23, -inf }
 0x146   : > { %v405_v43 = vsel %vm402_vm1, %v404_v32, %v400_v33  ;;  %v526_v48 = vmax.f32 %v519_v6, %v525_v34  ;;  %v529_v51 = vmax.f32 %v522_v44, %v524_v45 }
 0x147   : > { %v406_v46 = vmul.f32 %v1000_v42, %v405_v43 }
 0x149   : > { %486 = vst [vmem:[#allocation1 + $0x7] ss:$9 sm:$0xff] %v406_v46  ;;  %v527_v49 = vsel %vm1132_vm12, %v406_v46, -inf }
 0x14a   : > { %v528_v50 = vmax.f32 %v520_v47, %v527_v49 }
 0x14c   : > { %v530_v52 = vmax.f32 %v526_v48, %v528_v50 }
 0x14e   : > { %v531_v53 = vmax.f32 %v529_v51, %v530_v52 }
 0x150   : > { %v487_v54 = vld [vmem:[#allocation1] sm:$0xff]  ;;  %v533_v60 = vperm.slane %v531_v53, 0 }
 0x151   : > { %508 = vmatpush.msra.mxu0 %v487_v54 }
 0x152   : > { %v535_v55 = vrot.slane %v533_v60, 1  ;;  %v536_v62 = vrot.slane %v533_v60, 2  ;;  %v537_v56 = vrot.slane %v533_v60, 3  ;;  %v538_v42 = vrot.slane %v533_v60, 4 }
 0x153   : > { %v539_v0 = vrot.slane %v533_v60, 5  ;;  %v540_v1 = vrot.slane %v533_v60, 6  ;;  %v541_v4 = vrot.slane %v533_v60, 7  ;;  %v549_v57 = vsub.f32 %v1088_v63, %v533_v60 }
 0x154   : > { %v550_v5 = vsub.f32 %v1093_v3, %v535_v55  ;;  %v551_v7 = vsub.f32 %v1101_v35, %v536_v62  ;;  %v552_v8 = vsub.f32 %v1112_v37, %v537_v56  ;;  %v553_v36 = vsub.f32 %v1121_v13, %v538_v42 }
 0x155   : > { %v554_v9 = vsub.f32 %v376_v61, %v539_v0  ;;  %v555_v58 = vsub.f32 %v391_v23, %v540_v1  ;;  %v557_v10 = vmul.f32 1.442695, %v549_v57  ;;  %v556_v59 = vsub.f32 %v406_v46, %v541_v4 }
 0x156   : > { %v559_v11 = vmul.f32 1.442695, %v550_v5  ;;  %v561_v12 = vmul.f32 1.442695, %v551_v7  ;;  %v563_v14 = vmul.f32 1.442695, %v552_v8 }
 0x157   : > { %910 = vpow2.f32 %v557_v10  ;;  %v565_v15 = vmul.f32 1.442695, %v553_v36  ;;  %v567_v38 = vmul.f32 1.442695, %v554_v9  ;;  %v569_v63 = vmul.f32 1.442695, %v555_v58 }
 0x158   : > { %912 = vpow2.f32 %v559_v11  ;;  %v571_v3 = vmul.f32 1.442695, %v556_v59 }
 0x159   : > { %914 = vpow2.f32 %v561_v12 }
 0x15a   : > { %916 = vpow2.f32 %v563_v14 }
 0x15b   : > { %918 = vpow2.f32 %v565_v15 }
 0x15c   : > { %920 = vpow2.f32 %v567_v38 }
 0x15d   : > { %v1166_v35 = vpop.eup %910  ;;  %922 = vpow2.f32 %v569_v63 }
 0x15e   : > { %v1168_v37 = vpop.eup %912  ;;  %924 = vpow2.f32 %v571_v3  ;;  %581 = vst [vmem:[#allocation1] ss:$9 sm:$0xff] %v1166_v35 }
 0x15f   : > { %v1171_v13 = vpop.eup %914  ;;  %583 = vst [vmem:[#allocation1 + $0x1] ss:$9 sm:$0xff] %v1168_v37 }
 0x160   : > { %v1174_v16 = vpop.eup %916  ;;  %585 = vst [vmem:[#allocation1 + $0x2] ss:$9 sm:$0xff] %v1171_v13 }
 0x161   : > { %v1177_v17 = vpop.eup %918  ;;  %587 = vst [vmem:[#allocation1 + $0x3] ss:$9 sm:$0xff] %v1174_v16 }
 0x162   : > { %v1180_v61 = vpop.eup %920  ;;  %589 = vst [vmem:[#allocation1 + $0x4] ss:$9 sm:$0xff] %v1177_v17  ;;  %v448_v19 = vpop.trf.xlu1 }
 0x163   : > { %v1183_v18 = vpop.eup %922  ;;  %591 = vst [vmem:[#allocation1 + $0x5] ss:$9 sm:$0xff] %v1180_v61  ;;  %864 = vmatmul.msk.f32.vlgmr.msra.gmra.mxu0 %vm1307_vm0, %v448_v19 }
 0x164   : > { %v1186_v39 = vpop.eup %924  ;;  %593 = vst [vmem:[#allocation1 + $0x6] ss:$9 sm:$0xff] %v1183_v18 }
 0x165   : > { %595 = vst [vmem:[#allocation1 + $0x7] ss:$9 sm:$0xff] %v1186_v39 }
 0x16c   : > { %v596_v20 = vld [vmem:[#allocation1] sm:$0xff] }
 0x16d   : > { %v598_v21 = vsel %vm1323_vm2, %v596_v20, 0.0 }
 0x16e   : > { %v599_v22 = vrot.slane %v598_v21, 4 }
 0x170   : > { %v600_v23 = vadd.f32 %v599_v22, %v598_v21 }
 0x172   : > { %v601_v24 = vrot.slane %v600_v23, 2 }
 0x174   : > { %v602_v25 = vadd.f32 %v601_v24, %v600_v23 }
 0x176   : > { %v603_v40 = vrot.slane %v602_v25, 1 }
 0x178   : > { %v604_v2 = vadd.f32 %v603_v40, %v602_v25 }
 0x17a   : > { %v605_v26 = vperm.slane %v604_v2, 0 }
 0x17c   : > { %v1192_v27 = vrot.slane %v605_v26, 1  ;;  %v1194_v41 = vrot.slane %v605_v26, 2  ;;  %v1196_v28 = vrot.slane %v605_v26, 3  ;;  %926 = vrcp.f32 %v605_v26 }
 0x17d   : > { %v1199_v29 = vrot.slane %v605_v26, 4  ;;  %v630_v30 = vand.u32 2147483647, %v605_v26  ;;  %v632_v31 = vand.u32 2147483648, %v605_v26  ;;  %v1205_v6 = vrot.slane %v605_v26, 5 }
 0x17e   : > { %928 = vrcp.f32 %v1192_v27  ;;  %v645_v32 = vand.u32 2147483647, %v1192_v27  ;;  %v647_v33 = vand.u32 2147483648, %v1192_v27  ;;  %v1207_v34 = vrot.slane %v605_v26, 6 }
 0x17f   : > { %930 = vrcp.f32 %v1194_v41  ;;  %v660_v43 = vand.u32 2147483647, %v1194_v41  ;;  %v662_v44 = vand.u32 2147483648, %v1194_v41  ;;  %v1211_v46 = vrot.slane %v605_v26, 7 }
 0x180   : > { %932 = vrcp.f32 %v1196_v28  ;;  %vm626_vm3 = vweird.f32 %v605_v26  ;;  %vm641_vm4 = vweird.f32 %v1192_v27  ;;  %vm1215_vm5 = vcmp.eq.f32.partialorder %v630_v30, 8.507059e+37 }
 0x181   : > { %934 = vrcp.f32 %v1199_v29  ;;  %v633_v50 = vor.u32 1.1754944e-38, %v632_v31  ;;  %v675_v51 = vand.u32 2147483647, %v1196_v28  ;;  %v677_v52 = vand.u32 2147483648, %v1196_v28 }
 0x182   : > { %v927_v45 = vpop.eup %926  ;;  %vm1222_vm6 = vcmp.eq.f32.partialorder %v645_v32, 8.507059e+37  ;;  %v648_v55 = vor.u32 1.1754944e-38, %v647_v33  ;;  %vm656_vm8 = vweird.f32 %v1194_v41  ;;  %vm1228_vm9 = vcmp.eq.f32.partialorder %v660_v43, 8.507059e+37 }
 0x183   : > { %v622_v48 = vmul.f32 %v927_v45, %v605_v26  ;;  %v663_v0 = vor.u32 1.1754944e-38, %v662_v44  ;;  %vm671_vm7 = vweird.f32 %v1196_v28  ;;  %936 = vrcp.f32 %v1205_v6 }
 0x184   : > { %v929_v47 = vpop.eup %928  ;;  %vm627_vm10 = vweird.f32 %v927_v45  ;;  %v690_v57 = vand.u32 2147483647, %v1199_v29  ;;  %v692_v5 = vand.u32 2147483648, %v1199_v29  ;;  %vm1237_vm11 = vcmp.eq.f32.partialorder %v675_v51, 8.507059e+37 }
 0x185   : > { %v931_v53 = vpop.eup %930  ;;  %v637_v54 = vmul.f32 %v929_v47, %v1192_v27  ;;  %v623_v62 = vsub.f32 1.0, %v622_v48  ;;  %v678_v58 = vor.u32 1.1754944e-38, %v677_v52  ;;  %vm642_vm12 = vweird.f32 %v929_v47  ;;  %vm628_vm15 = vmor %vm626_vm3, %vm627_vm10 }
 0x186   : > { %v652_v56 = vmul.f32 %v931_v53, %v1194_v41  ;;  %v933_v1 = vpop.eup %932  ;;  %vm657_vm13 = vweird.f32 %v931_v53  ;;  %vm686_vm14 = vweird.f32 %v1199_v29  ;;  %938 = vrcp.f32 %v1207_v34  ;;  %vm643_vm0 = vmor %vm641_vm4, %vm642_vm12 }
 0x187   : > { %v638_v4 = vsub.f32 1.0, %v637_v54  ;;  %v624_v7 = vmul.f32 %v927_v45, %v623_v62  ;;  %v667_v36 = vmul.f32 %v933_v1, %v1196_v28  ;;  %v935_v10 = vpop.eup %934  ;;  %vm672_vm1 = vweird.f32 %v933_v1  ;;  %vm658_vm3 = vmor %vm656_vm8, %vm657_vm13 }
 0x188   : > { %v653_v8 = vsub.f32 1.0, %v652_v56  ;;  %v682_v15 = vmul.f32 %v935_v10, %v1199_v29  ;;  %vm1246_vm2 = vcmp.eq.f32.partialorder %v690_v57, 8.507059e+37  ;;  %v693_v3 = vor.u32 1.1754944e-38, %v692_v5 }
 0x189   : > { %v639_v59 = vmul.f32 %v929_v47, %v638_v4  ;;  %v625_v11 = vadd.f32 %v927_v45, %v624_v7  ;;  %v668_v14 = vsub.f32 1.0, %v667_v36  ;;  %v707_v19 = vand.u32 2147483648, %v1205_v6  ;;  %v937_v20 = vpop.eup %936 }
 0x18a   : > { %v654_v12 = vmul.f32 %v931_v53, %v653_v8  ;;  %v683_v24 = vsub.f32 1.0, %v682_v15  ;;  %vm687_vm10 = vweird.f32 %v935_v10  ;;  %v697_v2 = vmul.f32 %v937_v20, %v1205_v6 }
 0x18b   : > { %v640_v38 = vadd.f32 %v929_v47, %v639_v59  ;;  %v629_v21 = vsel %vm628_vm15, %v927_v45, %v625_v11  ;;  %v669_v23 = vmul.f32 %v933_v1, %v668_v14  ;;  %vm702_vm4 = vweird.f32 %v937_v20 }
 0x18c   : > { %v655_v22 = vadd.f32 %v931_v53, %v654_v12  ;;  %v634_v25 = vsel %vm1215_vm5, %v633_v50, %v629_v21  ;;  %v939_v32 = vpop.eup %938  ;;  %v684_v41 = vmul.f32 %v935_v10, %v683_v24  ;;  %v698_v44 = vsub.f32 1.0, %v697_v2  ;;  %vm688_vm5 = vmor %vm686_vm14, %vm687_vm10 }
 0x18d   : > { %v644_v40 = vsel %vm643_vm0, %v929_v47, %v640_v38  ;;  %v635_v26 = vmul.f32 %v1166_v35, %v634_v25  ;;  %v670_v31 = vadd.f32 %v933_v1, %v669_v23  ;;  %vm673_vm0 = vmor %vm671_vm7, %vm672_vm1  ;;  %v705_v47 = vand.u32 2147483647, %v1205_v6 }
 0x18e   : > { %v649_v27 = vsel %vm1222_vm6, %v648_v55, %v644_v40  ;;  %v659_v30 = vsel %vm658_vm3, %v931_v53, %v655_v22  ;;  %v712_v48 = vmul.f32 %v939_v32, %v1207_v34  ;;  %v685_v49 = vadd.f32 %v935_v10, %v684_v41 }
 0x18f   : > { %v650_v33 = vmul.f32 %v1168_v37, %v649_v27  ;;  %v664_v43 = vsel %vm1228_vm9, %v663_v0, %v659_v30  ;;  %v674_v35 = vsel %vm673_vm0, %v933_v1, %v670_v31  ;;  %749 = vst [vmem:[#allocation1] ss:$9 sm:$0xff] %v635_v26  ;;  %v699_v50 = vmul.f32 %v937_v20, %v698_v44 }
 0x190   : > { %v665_v45 = vmul.f32 %v1171_v13, %v664_v43  ;;  %v679_v37 = vsel %vm1237_vm11, %v678_v58, %v674_v35  ;;  %vm701_vm6 = vweird.f32 %v1205_v6  ;;  %v713_v13 = vsub.f32 1.0, %v712_v48 }
 0x191   : > { %751 = vst [vmem:[#allocation1 + $0x1] ss:$9 sm:$0xff] %v650_v33  ;;  %v680_v28 = vmul.f32 %v1174_v16, %v679_v37  ;;  %940 = vrcp.f32 %v1211_v46  ;;  %v689_v51 = vsel %vm688_vm5, %v935_v10, %v685_v49  ;;  %v700_v52 = vadd.f32 %v937_v20, %v699_v50  ;;  %vm703_vm8 = vmor %vm701_vm6, %vm702_vm4 }
 0x192   : > { %753 = vst [vmem:[#allocation1 + $0x2] ss:$9 sm:$0xff] %v665_v45  ;;  %v708_v53 = vor.u32 1.1754944e-38, %v707_v19  ;;  %v722_v54 = vand.u32 2147483648, %v1207_v34  ;;  %v694_v60 = vsel %vm1246_vm2, %v693_v3, %v689_v51  ;;  %v714_v16 = vmul.f32 %v939_v32, %v713_v13 }
 0x193   : > { %vm717_vm9 = vweird.f32 %v939_v32  ;;  %v720_v29 = vand.u32 2147483647, %v1207_v34  ;;  %755 = vst [vmem:[#allocation1 + $0x3] ss:$9 sm:$0xff] %v680_v28  ;;  %v695_v6 = vmul.f32 %v1177_v17, %v694_v60  ;;  %v704_v55 = vsel %vm703_vm8, %v937_v20, %v700_v52 }
 0x194   : > { %vm706_vm7 = vcmp.eq.f32.partialorder %v705_v47, 8.507059e+37  ;;  %v715_v56 = vadd.f32 %v939_v32, %v714_v16  ;;  %vm716_vm11 = vweird.f32 %v1207_v34  ;;  %v723_v0 = vor.u32 1.1754944e-38, %v722_v54 }
 0x195   : > { %v709_v62 = vsel %vm706_vm7, %v708_v53, %v704_v55  ;;  %vm718_vm12 = vmor %vm716_vm11, %vm717_vm9  ;;  %757 = vst [vmem:[#allocation1 + $0x4] ss:$9 sm:$0xff] %v695_v6  ;;  %vm721_vm13 = vcmp.eq.f32.partialorder %v720_v29, 8.507059e+37  ;;  %v737_v8 = vand.u32 2147483648, %v1211_v46  ;;  %vm731_vm15 = vweird.f32 %v1211_v46 }
 0x196   : > { %v710_v42 = vmul.f32 %v1180_v61, %v709_v62  ;;  %v719_v4 = vsel %vm718_vm12, %v939_v32, %v715_v56  ;;  %v735_v61 = vand.u32 2147483647, %v1211_v46  ;;  %vm1334_vm3 = vcmask 818176  }
 0x197   : > { %v941_v1 = vpop.eup %940  ;;  %v724_v57 = vsel %vm721_vm13, %v723_v0, %v719_v4  ;;  %v738_v9 = vor.u32 1.1754944e-38, %v737_v8  ;;  %vm1335_vm10 = vmmov %vm1334_vm3  ;;  %vm1336_vm0 = vcmask 64512  }
 0x198   : > { %v727_v5 = vmul.f32 %v941_v1, %v1211_v46  ;;  %759 = vst [vmem:[#allocation1 + $0x5] ss:$9 sm:$0xff] %v710_v42  ;;  %v725_v17 = vmul.f32 %v1183_v18, %v724_v57  ;;  %vm732_vm14 = vweird.f32 %v941_v1  ;;  %vm736_vm2 = vcmp.eq.f32.partialorder %v735_v61, 8.507059e+37 }
 0x199   : > { %vm733_vm1 = vmor %vm731_vm15, %vm732_vm14 }
 0x19a   : > { %v728_v7 = vsub.f32 1.0, %v727_v5  ;;  %761 = vst [vmem:[#allocation1 + $0x6] ss:$9 sm:$0xff] %v725_v17 }
 0x19c   : > { %v729_v36 = vmul.f32 %v941_v1, %v728_v7 }
 0x19e   : > { %v730_v34 = vadd.f32 %v941_v1, %v729_v36 }
 0x1a0   : > { %v734_v58 = vsel %vm733_vm1, %v941_v1, %v730_v34 }
 0x1a1   : > { %v739_v10 = vsel %vm736_vm2, %v738_v9, %v734_v58 }
 0x1a2   : > { %v740_v59 = vmul.f32 %v1186_v39, %v739_v10 }
 0x1a4   : > { %763 = vst [vmem:[#allocation1 + $0x7] ss:$9 sm:$0xff] %v740_v59 }
 0x1ab   : > { %v764_v11 = vld [vmem:[#allocation1] sm:$0xff] }
 0x1e0   : > { %v510_v18 = vpop.f32.mrf.mxu0 }
 0x1e1   : > { %865 = vmatpush.xpose.msk.msra.mxu1 %vm1334_vm3, %v510_v18 }
 0x1e4   : > { %866 = vmatmul.msk.f32.vlgmr.msra.gmra.mxu1 %vm1335_vm10, %v764_v11 }
 0x261   : > { %v787_v12 = vpop.f32.mrf.mxu1 }
 0x262   : > { %790 = vst.msk [vmem:[%s155_s20] sm:$0xff] %vm1336_vm0, %v787_v12 }
 0x263 PF: > { %s12_s9 = sadd.s32 1, %s948_s9  }
 0x264   : > { %p9_p4 = scmp.ge.s32.totalorder %s12_s9, 4  }
 0x266   :  { %11 = sbr.rel (!%p9_p4) target bundleno = 1 (0x1), region = 103 }

</bundles_post_ra>
